<compile_context>
chip_gen: v7x
topology: tpu7x:2x2x1
jax: 0.10.0
libtpu: 0.0.40
codegen_flags: <defaults>
</compile_context>

<pallas_src>
import jax
import jax.numpy as jnp
from jax import lax
from jax.experimental import pallas as pl
from jax.experimental.pallas import tpu as pltpu


def _round_up(x, m):
    return (x + m - 1) // m * m


def _pad_gate_mat(w, H, Hp):
    """(4H, H) LSTM weight -> (4Hp, Hp), zero-padded inside each gate block."""
    w4 = w.reshape(4, H, H)
    w4 = jnp.pad(w4, ((0, 0), (0, Hp - H), (0, Hp - H)))
    return w4.reshape(4 * Hp, Hp)


def _pad_gate_vec(b, H, Hp):
    b4 = b.reshape(4, H)
    b4 = jnp.pad(b4, ((0, 0), (0, Hp - H)))
    return b4.reshape(4 * Hp)


def _lstm_sim_kernel(max_len_ref, gx_ref, len_ref, whh_hbm, out_ref,
                     whh_scr, h_scr, c_scr, acc_scr):
    """One (batch-tile, time-chunk) grid step of the fused LSTM recurrence.

    max_len_ref: (1,) int32 in SMEM (scalar prefetch) -- skip dead tail chunks.
    gx_ref : (T, 2bt, 4Hp)  precomputed  x_t @ W_ih^T + b_ih + b_hh   (gx_dtype)
    len_ref: (2bt, 1) f32   sequence lengths for this batch tile
    whh_hbm: (Hp, 4Hp)      W_hh^T, left in HBM; copied once into whh_scr
    out_ref: (bt, 1) f32    exp(-L1(r1, r2)); written on the last time chunk
    whh_scr: (Hp, 4Hp)      single-buffered VMEM copy of W_hh^T
    h/c/acc: (2bt, Hp) f32  persistent LSTM state + masked h-sum (per batch tile)
    """
    T = gx_ref.shape[0]
    Hp = whh_scr.shape[0]
    bt = out_ref.shape[0]
    chunk = pl.program_id(1)

    @pl.when(chunk == 0)
    def _init():
        # Invariant weight: one DMA per batch tile, no 2x pipeline buffering.
        pltpu.sync_copy(whh_hbm, whh_scr)
        h_scr[...] = jnp.zeros_like(h_scr)
        c_scr[...] = jnp.zeros_like(c_scr)
        acc_scr[...] = jnp.zeros_like(acc_scr)

    len_f = len_ref[...]                                   # (2bt, 1) f32

    # Skip the recurrence for chunks entirely past the longest sequence.
    @pl.when(chunk * T < max_len_ref[0])
    def _compute():
        whh = whh_scr[...]                                 # hoisted out of loop

        def step(t, carry):
            h, c, acc = carry
            # Only the recurrent matmul sits on the serial critical path; the
            # input projection + bias were folded into gx in the wrapper.
            gates = gx_ref[t].astype(jnp.float32) + jnp.dot(
                h.astype(whh.dtype), whh, preferred_element_type=jnp.float32)
            # Lane-aligned gate slices (Hp % 128 == 0), PyTorch order [i,f,g,o].
            i_g = jax.nn.sigmoid(gates[:, 0 * Hp:1 * Hp])
            f_g = jax.nn.sigmoid(gates[:, 1 * Hp:2 * Hp])
            g_g = jnp.tanh(gates[:, 2 * Hp:3 * Hp])
            o_g = jax.nn.sigmoid(gates[:, 3 * Hp:4 * Hp])
            c = f_g * c + i_g * g_g
            h = o_g * jnp.tanh(c)
            t_global = chunk * T + t
            mask = (len_f > t_global).astype(jnp.float32)  # 1 while t < length
            acc = acc + h * mask                           # == packed-LSTM sum
            return h, c, acc

        # Bounded unroll: amortizes loop overhead without code-size blowup.
        h, c, acc = lax.fori_loop(
            0, T, step, (h_scr[...], c_scr[...], acc_scr[...]),
            unroll=min(8, T))
        h_scr[...] = h
        c_scr[...] = c
        acc_scr[...] = acc

    # Output block index depends only on the batch tile, and the time axis is
    # the innermost ("arbitrary") grid axis, so the single writeback of this
    # block happens after the finalize below has run.
    @pl.when(chunk == pl.num_programs(1) - 1)
    def _finalize():
        repre = acc_scr[...] / jnp.maximum(len_f, 1.0)     # masked mean over time
        dist = jnp.sum(jnp.abs(repre[:bt] - repre[bt:]), axis=-1, keepdims=True)
        out_ref[...] = jnp.exp(-dist)                      # (bt, 1)


def sts_baseline_forward(text1, text2, params, *, t_chunk=64, batch_tile=None,
                         gx_dtype=jnp.bfloat16):
    emb = params["embedding"].astype(jnp.float32)          # (V, H), row 0 zeros
    w_ih = params["w_ih"].astype(jnp.float32)              # (4H, H)
    w_hh = params["w_hh"].astype(jnp.float32)              # (4H, H)
    bias = (params["b_ih"] + params["b_hh"]).astype(jnp.float32)   # (4H,)

    B, S = text1.shape
    H = emb.shape[1]
    Hp = _round_up(H, 128)                                 # lane-aligned gates

    # Zero-pad H -> Hp (per gate block). Padded hidden units see zero weights
    # and biases, so their h stays exactly 0 and the L1 distance is unchanged.
    emb_p = jnp.pad(emb, ((0, 0), (0, Hp - H)))
    w_ih_p = _pad_gate_mat(w_ih, H, Hp)
    w_hh_p = _pad_gate_mat(w_hh, H, Hp)
    bias_p = _pad_gate_vec(bias, H, Hp)

    # Batch tiling: bt pairs per tile (>=8 sublanes); padded rows are all-zero
    # tokens (length 0 -> masked out -> sliced off at the end).
    if batch_tile is None:
        bt = min(_round_up(B, 8), 128)
    else:
        bt = _round_up(batch_tile, 8)
    Bp = _round_up(B, bt)
    n_btiles = Bp // bt

    t1 = jnp.pad(text1, ((0, Bp - B), (0, 0)))
    t2 = jnp.pad(text2, ((0, Bp - B), (0, 0)))
    len1 = jnp.sum((t1 > 0).astype(jnp.int32), axis=-1)
    len2 = jnp.sum((t2 > 0).astype(jnp.int32), axis=-1)
    max_len = jnp.maximum(jnp.max(len1), jnp.max(len2)).astype(jnp.int32).reshape(1)

    # Tile-local fused batch: tile b holds [its bt text1 rows ; its bt text2 rows]
    # so the final L1 distance is computed entirely inside one output block.
    toks = jnp.concatenate(
        [t1.reshape(n_btiles, bt, S), t2.reshape(n_btiles, bt, S)], axis=1
    ).reshape(n_btiles * 2 * bt, S)
    lens = jnp.concatenate(
        [len1.reshape(n_btiles, bt), len2.reshape(n_btiles, bt)], axis=1
    ).reshape(n_btiles * 2 * bt).astype(jnp.float32)[:, None]          # (NB, 1)

    # Hoisted input projection: one (V,Hp)x(Hp,4Hp) matmul + gather, instead of
    # a per-timestep x@W_ih inside the serial recurrence. Streamed in gx_dtype
    # (bf16 by default) -- the only HBM traffic that scales with S.
    proj_table = (emb_p @ w_ih_p.T + bias_p).astype(gx_dtype)          # (V, 4Hp)
    gx = jnp.transpose(proj_table[toks], (1, 0, 2))                    # (S, NB, 4Hp)

    # Time-chunk sizing: big enough to amortize ~0.35us/step grid overhead, but
    # the double-buffered gx block must stay well inside v7x's 64 MiB VMEM.
    itemsize = jnp.dtype(gx_dtype).itemsize
    bytes_per_step = 2 * bt * 4 * Hp * itemsize
    gx_buf_budget = 16 * 1024 * 1024                       # per pipeline buffer
    tc_cap = max(8, (gx_buf_budget // bytes_per_step) // 8 * 8)
    tc = max(8, min(t_chunk, tc_cap, _round_up(S, 8)))
    n_chunks = pl.cdiv(S, tc)
    s_pad = n_chunks * tc
    if s_pad != S:
        gx = jnp.pad(gx, ((0, s_pad - S), (0, 0), (0, 0)))   # padded steps masked

    whh_t = w_hh_p.T.astype(gx_dtype)                        # (Hp, 4Hp)

    vmem_need = (2 * tc * 2 * bt * 4 * Hp * itemsize         # gx double buffer
                 + Hp * 4 * Hp * itemsize                    # whh scratch (x1)
                 + 3 * 2 * bt * Hp * 4                       # h/c/acc f32
                 + 2 * 1024 * 1024)                          # slack
    vmem_limit = int(min(max(vmem_need, 32 * 1024 * 1024), 48 * 1024 * 1024))

    sim = pl.pallas_call(
        _lstm_sim_kernel,
        out_shape=jax.ShapeDtypeStruct((Bp, 1), jnp.float32),
        grid_spec=pltpu.PrefetchScalarGridSpec(
            num_scalar_prefetch=1,                           # max_len -> SMEM
            grid=(n_btiles, n_chunks),                       # batch x time
            in_specs=[
                # Time-tiled activations: chunk k+1 DMA double-buffers under
                # the recurrence on chunk k.
                pl.BlockSpec((tc, 2 * bt, 4 * Hp), lambda b, k, ml: (k, b, 0)),
                pl.BlockSpec((2 * bt, 1), lambda b, k, ml: (b, 0)),
                # Grid-invariant W_hh^T: stays in HBM, copied once to scratch
                # (no wasted second pipeline buffer).
                pl.BlockSpec(memory_space=pl.ANY),
            ],
            out_specs=pl.BlockSpec((bt, 1), lambda b, k, ml: (b, 0)),
            scratch_shapes=[
                pltpu.VMEM((Hp, 4 * Hp), gx_dtype),          # whh (single copy)
                pltpu.VMEM((2 * bt, Hp), jnp.float32),       # h
                pltpu.VMEM((2 * bt, Hp), jnp.float32),       # c
                pltpu.VMEM((2 * bt, Hp), jnp.float32),       # masked h-sum
            ],
        ),
        compiler_params=pltpu.CompilerParams(
            # Batch tiles are independent (shard across v7x's 2 TCs); the time
            # recurrence is serial.
            dimension_semantics=("parallel", "arbitrary"),
            vmem_limit_bytes=vmem_limit,
        ),
    )(max_len, gx, lens, whh_t)
    return sim[:B, 0]                                        # (B,)


def reference_forward(text1, text2, params):
    """Pure-JAX reference mirroring the PyTorch forward."""
    emb_table = params["embedding"]
    H = emb_table.shape[1]
    w_ih, w_hh = params["w_ih"], params["w_hh"]
    bias = params["b_ih"] + params["b_hh"]

    def lstm_repre(tokens):
        B, S = tokens.shape
        lengths = jnp.sum(tokens > 0, axis=-1).astype(jnp.float32)
        emb = emb_table[tokens].astype(jnp.float32)          # (B, S, H)

        def step(carry, x_t):
            h, c = carry
            gates = x_t @ w_ih.T + h @ w_hh.T + bias
            i = jax.nn.sigmoid(gates[:, :H])
            f = jax.nn.sigmoid(gates[:, H:2 * H])
            g = jnp.tanh(gates[:, 2 * H:3 * H])
            o = jax.nn.sigmoid(gates[:, 3 * H:4 * H])
            c = f * c + i * g
            h = o * jnp.tanh(c)
            return (h, c), h

        h0 = jnp.zeros((B, H), jnp.float32)
        c0 = jnp.zeros((B, H), jnp.float32)
        _, hs = lax.scan(step, (h0, c0), jnp.transpose(emb, (1, 0, 2)))  # (S,B,H)
        mask = (jnp.arange(S)[:, None, None] < lengths[None, :, None]).astype(jnp.float32)
        return jnp.sum(hs * mask, axis=0) / lengths[:, None]

    r1 = lstm_repre(text1)
    r2 = lstm_repre(text2)
    return jnp.exp(-jnp.sum(jnp.abs(r1 - r2), axis=-1))


def init_params(key, vocab_size, hidden_size):
    k_emb, k_wih, k_whh, k_bih, k_bhh = jax.random.split(key, 5)
    emb = jax.random.normal(k_emb, (vocab_size, hidden_size), jnp.float32)
    emb = emb.at[0].set(0.0)                                 # padding_idx = 0
    k = 1.0 / jnp.sqrt(jnp.float32(hidden_size))
    u = lambda kk, shape: jax.random.uniform(kk, shape, jnp.float32, -k, k)
    return {
        "embedding": emb,
        "w_ih": u(k_wih, (4 * hidden_size, hidden_size)),
        "w_hh": u(k_whh, (4 * hidden_size, hidden_size)),
        "b_ih": u(k_bih, (4 * hidden_size,)),
        "b_hh": u(k_bhh, (4 * hidden_size,)),
    }


if __name__ == "__main__":
    VOCAB, HIDDEN = 50, 32
    B, S = 2, 8

    key = jax.random.PRNGKey(0)
    k_p, k_t1, k_t2 = jax.random.split(key, 3)
    params = init_params(k_p, VOCAB, HIDDEN)

    # Token ids in [1, VOCAB); trailing padding (zeros) per PyTorch convention.
    text1 = jax.random.randint(k_t1, (B, S), 1, VOCAB, dtype=jnp.int32)
    text2 = jax.random.randint(k_t2, (B, S), 1, VOCAB, dtype=jnp.int32)
    len1 = jnp.array([8, 5], jnp.int32)
    len2 = jnp.array([6, 8], jnp.int32)
    pos = jnp.arange(S)[None, :]
    text1 = jnp.where(pos < len1[:, None], text1, 0)
    text2 = jnp.where(pos < len2[:, None], text2, 0)

    sim_ref = jax.block_until_ready(reference_forward(text1, text2, params))

    # f32-streamed path: exact-precision check against the pure-JAX reference.
    sim_f32 = jax.block_until_ready(
        sts_baseline_forward(text1, text2, params, gx_dtype=jnp.float32))
    assert sim_f32.shape == (B,)
    assert jnp.allclose(sim_f32, sim_ref, atol=1e-4, rtol=1e-4), (sim_f32, sim_ref)

    # bf16-streamed gx path (production default): loose sanity check (bf16
    # rounding of the input projection only; accumulation stays f32).
    sim_bf16 = jax.block_until_ready(sts_baseline_forward(text1, text2, params))
    assert sim_bf16.shape == (B,)
    assert bool(jnp.all(jnp.isfinite(sim_bf16)))
    assert jnp.allclose(sim_bf16, sim_ref, atol=5e-3, rtol=0.25), (sim_bf16, sim_ref)

    print("KERNEL_OK")
</pallas_src>

<mosaic_0001>
module attributes {stable_mosaic.version = 11 : i64} {
  func.func @_lstm_sim_kernel(%arg0: i32, %arg1: i32, %arg2: memref<1xi32, #tpu.memory_space<smem>>, %arg3: memref<8x16x512xf32, #tpu.memory_space<vmem>>, %arg4: memref<16x1xf32, #tpu.memory_space<vmem>>, %arg5: memref<128x512xf32, #tpu.memory_space<any>>, %arg6: memref<8x1xf32, #tpu.memory_space<vmem>>, %arg7: memref<128x512xf32, #tpu.memory_space<vmem>>, %arg8: memref<16x128xf32, #tpu.memory_space<vmem>>, %arg9: memref<16x128xf32, #tpu.memory_space<vmem>>, %arg10: memref<16x128xf32, #tpu.memory_space<vmem>>) attributes {dimension_semantics = [#tpu.dimension_semantics<parallel>, #tpu.dimension_semantics<arbitrary>], iteration_bounds = array<i64: 1, 1>, scalar_prefetch = 1 : i64, scratch_operands = 4 : i64, tpu.core_type = #tpu.core_type<tc>, window_params = [{transform_indices = @transform_0, window_bounds = array<i64: 8, 16, 512>}, {transform_indices = @transform_1, window_bounds = array<i64: 16, 1>}, {}, {transform_indices = @transform_3, window_bounds = array<i64: 8, 1>}]} {
    %c0_i32 = arith.constant 0 : i32
    %0 = arith.cmpi eq, %arg1, %c0_i32 : i32
    %1 = arith.extui %0 : i1 to i32
    %c0_i32_0 = arith.constant 0 : i32
    %2 = arith.cmpi ne, %1, %c0_i32_0 : i32
    scf.if %2 {
      "tpu.region"() ({
        %18 = tpu.sem_alloc : memref<!tpu.dma_semaphore, #tpu.memory_space<semaphore_mem>>
        tpu.enqueue_dma source(%arg5 : memref<128x512xf32, #tpu.memory_space<any>>) target(%arg7 : memref<128x512xf32, #tpu.memory_space<vmem>>) target_semaphore(%18 : memref<!tpu.dma_semaphore, #tpu.memory_space<semaphore_mem>>)
        tpu.wait_dma2 semaphore(%18 : memref<!tpu.dma_semaphore, #tpu.memory_space<semaphore_mem>>) src(%arg5 : memref<128x512xf32, #tpu.memory_space<any>>) dst(%arg7 : memref<128x512xf32, #tpu.memory_space<vmem>>)
        tpu.yield
      }) : () -> ()
      %cst = arith.constant 0.000000e+00 : f32
      %12 = vector.broadcast %cst : f32 to vector<16x128xf32>
      %c0_6 = arith.constant 0 : index
      %c0_7 = arith.constant 0 : index
      %13 = vector.load %arg8[%c0_6, %c0_7] : memref<16x128xf32, #tpu.memory_space<vmem>>, vector<16x128xf32>
      tpu.vector_store %arg8[%c0_6, %c0_7], %12 {strides = array<i32>} : memref<16x128xf32, #tpu.memory_space<vmem>>, vector<16x128xf32>,
      %cst_8 = arith.constant 0.000000e+00 : f32
      %14 = vector.broadcast %cst_8 : f32 to vector<16x128xf32>
      %c0_9 = arith.constant 0 : index
      %c0_10 = arith.constant 0 : index
      %15 = vector.load %arg9[%c0_9, %c0_10] : memref<16x128xf32, #tpu.memory_space<vmem>>, vector<16x128xf32>
      tpu.vector_store %arg9[%c0_9, %c0_10], %14 {strides = array<i32>} : memref<16x128xf32, #tpu.memory_space<vmem>>, vector<16x128xf32>,
      %cst_11 = arith.constant 0.000000e+00 : f32
      %16 = vector.broadcast %cst_11 : f32 to vector<16x128xf32>
      %c0_12 = arith.constant 0 : index
      %c0_13 = arith.constant 0 : index
      %17 = vector.load %arg10[%c0_12, %c0_13] : memref<16x128xf32, #tpu.memory_space<vmem>>, vector<16x128xf32>
      tpu.vector_store %arg10[%c0_12, %c0_13], %16 {strides = array<i32>} : memref<16x128xf32, #tpu.memory_space<vmem>>, vector<16x128xf32>,
    } else {
    }
    %c0 = arith.constant 0 : index
    %c0_1 = arith.constant 0 : index
    %3 = vector.load %arg4[%c0, %c0_1] : memref<16x1xf32, #tpu.memory_space<vmem>>, vector<16x1xf32>
    %c8_i32 = arith.constant 8 : i32
    %4 = arith.muli %arg1, %c8_i32 : i32
    %c0_2 = arith.constant 0 : index
    %5 = memref.load %arg2[%c0_2] : memref<1xi32, #tpu.memory_space<smem>>
    %6 = arith.cmpi slt, %4, %5 : i32
    %7 = arith.extui %6 : i1 to i32
    %c0_i32_3 = arith.constant 0 : i32
    %8 = arith.cmpi ne, %7, %c0_i32_3 : i32
    scf.if %8 {
      %c0_6 = arith.constant 0 : index
      %c0_7 = arith.constant 0 : index
      %12 = vector.load %arg7[%c0_6, %c0_7] : memref<128x512xf32, #tpu.memory_space<vmem>>, vector<128x512xf32>
      %c0_8 = arith.constant 0 : index
      %c0_9 = arith.constant 0 : index
      %13 = vector.load %arg8[%c0_8, %c0_9] : memref<16x128xf32, #tpu.memory_space<vmem>>, vector<16x128xf32>
      %c0_10 = arith.constant 0 : index
      %c0_11 = arith.constant 0 : index
      %14 = vector.load %arg9[%c0_10, %c0_11] : memref<16x128xf32, #tpu.memory_space<vmem>>, vector<16x128xf32>
      %c0_12 = arith.constant 0 : index
      %c0_13 = arith.constant 0 : index
      %15 = vector.load %arg10[%c0_12, %c0_13] : memref<16x128xf32, #tpu.memory_space<vmem>>, vector<16x128xf32>
      %c0_i32_14 = arith.constant 0 : i32
      %16 = arith.index_cast %c0_i32_14 : i32 to index
      %c0_15 = arith.constant 0 : index
      %c0_16 = arith.constant 0 : index
      %17 = vector.load %arg3[%16, %c0_15, %c0_16] : memref<8x16x512xf32, #tpu.memory_space<vmem>>, vector<1x16x512xf32>
      %18 = vector.shape_cast %17 : vector<1x16x512xf32> to vector<16x512xf32>
      %cst = arith.constant dense<0.000000e+00> : vector<16x512xf32>
      %19 = tpu.matmul %13, %12, %cst {dimension_numbers = #tpu.dot_dimension_numbers<[1], [0], [0], [1], [0, 0, 1, 1], [], []>} : vector<16x128xf32>, vector<128x512xf32>, vector<16x512xf32> -> vector<16x512xf32>
      %20 = arith.addf %18, %19 : vector<16x512xf32>
      %21 = vector.extract_strided_slice %20 {offsets = [0, 0], sizes = [16, 128], strides = [1, 1]} : vector<16x512xf32> to vector<16x128xf32>
      %22 = arith.negf %21 : vector<16x128xf32>
      %23 = math.exp %22 : vector<16x128xf32>
      %cst_17 = arith.constant 1.000000e+00 : f32
      %24 = vector.broadcast %cst_17 : f32 to vector<16x128xf32>
      %25 = arith.addf %24, %23 : vector<16x128xf32>
      %26 = arith.divf %24, %25 : vector<16x128xf32>
      %27 = vector.extract_strided_slice %20 {offsets = [0, 128], sizes = [16, 128], strides = [1, 1]} : vector<16x512xf32> to vector<16x128xf32>
      %28 = arith.negf %27 : vector<16x128xf32>
      %29 = math.exp %28 : vector<16x128xf32>
      %cst_18 = arith.constant 1.000000e+00 : f32
      %30 = vector.broadcast %cst_18 : f32 to vector<16x128xf32>
      %31 = arith.addf %30, %29 : vector<16x128xf32>
      %32 = arith.divf %30, %31 : vector<16x128xf32>
      %33 = vector.extract_strided_slice %20 {offsets = [0, 256], sizes = [16, 128], strides = [1, 1]} : vector<16x512xf32> to vector<16x128xf32>
      %34 = math.tanh %33 : vector<16x128xf32>
      %35 = vector.extract_strided_slice %20 {offsets = [0, 384], sizes = [16, 128], strides = [1, 1]} : vector<16x512xf32> to vector<16x128xf32>
      %36 = arith.negf %35 : vector<16x128xf32>
      %37 = math.exp %36 : vector<16x128xf32>
      %cst_19 = arith.constant 1.000000e+00 : f32
      %38 = vector.broadcast %cst_19 : f32 to vector<16x128xf32>
      %39 = arith.addf %38, %37 : vector<16x128xf32>
      %40 = arith.divf %38, %39 : vector<16x128xf32>
      %41 = arith.mulf %32, %14 : vector<16x128xf32>
      %42 = arith.mulf %26, %34 : vector<16x128xf32>
      %43 = arith.addf %41, %42 : vector<16x128xf32>
      %44 = math.tanh %43 : vector<16x128xf32>
      %45 = arith.mulf %40, %44 : vector<16x128xf32>
      %c8_i32_20 = arith.constant 8 : i32
      %46 = arith.muli %arg1, %c8_i32_20 : i32
      %47 = arith.addi %46, %c0_i32_14 : i32
      %48 = arith.sitofp %47 : i32 to f32
      %49 = vector.broadcast %48 : f32 to vector<16x1xf32>
      %50 = arith.cmpf ogt, %3, %49 : vector<16x1xf32>
      %51 = arith.extui %50 : vector<16x1xi1> to vector<16x1xi32>
      %52 = arith.sitofp %51 : vector<16x1xi32> to vector<16x1xf32>
      %53 = vector.broadcast %52 : vector<16x1xf32> to vector<16x128xf32>
      %54 = arith.mulf %45, %53 : vector<16x128xf32>
      %55 = arith.addf %15, %54 : vector<16x128xf32>
      %c1_i32 = arith.constant 1 : i32
      %56 = arith.index_cast %c1_i32 : i32 to index
      %c0_21 = arith.constant 0 : index
      %c0_22 = arith.constant 0 : index
      %57 = vector.load %arg3[%56, %c0_21, %c0_22] : memref<8x16x512xf32, #tpu.memory_space<vmem>>, vector<1x16x512xf32>
      %58 = vector.shape_cast %57 : vector<1x16x512xf32> to vector<16x512xf32>
      %cst_23 = arith.constant dense<0.000000e+00> : vector<16x512xf32>
      %59 = tpu.matmul %45, %12, %cst_23 {dimension_numbers = #tpu.dot_dimension_numbers<[1], [0], [0], [1], [0, 0, 1, 1], [], []>} : vector<16x128xf32>, vector<128x512xf32>, vector<16x512xf32> -> vector<16x512xf32>
      %60 = arith.addf %58, %59 : vector<16x512xf32>
      %61 = vector.extract_strided_slice %60 {offsets = [0, 0], sizes = [16, 128], strides = [1, 1]} : vector<16x512xf32> to vector<16x128xf32>
      %62 = arith.negf %61 : vector<16x128xf32>
      %63 = math.exp %62 : vector<16x128xf32>
      %cst_24 = arith.constant 1.000000e+00 : f32
      %64 = vector.broadcast %cst_24 : f32 to vector<16x128xf32>
      %65 = arith.addf %64, %63 : vector<16x128xf32>
      %66 = arith.divf %64, %65 : vector<16x128xf32>
      %67 = vector.extract_strided_slice %60 {offsets = [0, 128], sizes = [16, 128], strides = [1, 1]} : vector<16x512xf32> to vector<16x128xf32>
      %68 = arith.negf %67 : vector<16x128xf32>
      %69 = math.exp %68 : vector<16x128xf32>
      %cst_25 = arith.constant 1.000000e+00 : f32
      %70 = vector.broadcast %cst_25 : f32 to vector<16x128xf32>
      %71 = arith.addf %70, %69 : vector<16x128xf32>
      %72 = arith.divf %70, %71 : vector<16x128xf32>
      %73 = vector.extract_strided_slice %60 {offsets = [0, 256], sizes = [16, 128], strides = [1, 1]} : vector<16x512xf32> to vector<16x128xf32>
      %74 = math.tanh %73 : vector<16x128xf32>
      %75 = vector.extract_strided_slice %60 {offsets = [0, 384], sizes = [16, 128], strides = [1, 1]} : vector<16x512xf32> to vector<16x128xf32>
      %76 = arith.negf %75 : vector<16x128xf32>
      %77 = math.exp %76 : vector<16x128xf32>
      %cst_26 = arith.constant 1.000000e+00 : f32
      %78 = vector.broadcast %cst_26 : f32 to vector<16x128xf32>
      %79 = arith.addf %78, %77 : vector<16x128xf32>
      %80 = arith.divf %78, %79 : vector<16x128xf32>
      %81 = arith.mulf %72, %43 : vector<16x128xf32>
      %82 = arith.mulf %66, %74 : vector<16x128xf32>
      %83 = arith.addf %81, %82 : vector<16x128xf32>
      %84 = math.tanh %83 : vector<16x128xf32>
      %85 = arith.mulf %80, %84 : vector<16x128xf32>
      %c8_i32_27 = arith.constant 8 : i32
      %86 = arith.muli %arg1, %c8_i32_27 : i32
      %87 = arith.addi %86, %c1_i32 : i32
      %88 = arith.sitofp %87 : i32 to f32
      %89 = vector.broadcast %88 : f32 to vector<16x1xf32>
      %90 = arith.cmpf ogt, %3, %89 : vector<16x1xf32>
      %91 = arith.extui %90 : vector<16x1xi1> to vector<16x1xi32>
      %92 = arith.sitofp %91 : vector<16x1xi32> to vector<16x1xf32>
      %93 = vector.broadcast %92 : vector<16x1xf32> to vector<16x128xf32>
      %94 = arith.mulf %85, %93 : vector<16x128xf32>
      %95 = arith.addf %55, %94 : vector<16x128xf32>
      %c2_i32 = arith.constant 2 : i32
      %96 = arith.index_cast %c2_i32 : i32 to index
      %c0_28 = arith.constant 0 : index
      %c0_29 = arith.constant 0 : index
      %97 = vector.load %arg3[%96, %c0_28, %c0_29] : memref<8x16x512xf32, #tpu.memory_space<vmem>>, vector<1x16x512xf32>
      %98 = vector.shape_cast %97 : vector<1x16x512xf32> to vector<16x512xf32>
      %cst_30 = arith.constant dense<0.000000e+00> : vector<16x512xf32>
      %99 = tpu.matmul %85, %12, %cst_30 {dimension_numbers = #tpu.dot_dimension_numbers<[1], [0], [0], [1], [0, 0, 1, 1], [], []>} : vector<16x128xf32>, vector<128x512xf32>, vector<16x512xf32> -> vector<16x512xf32>
      %100 = arith.addf %98, %99 : vector<16x512xf32>
      %101 = vector.extract_strided_slice %100 {offsets = [0, 0], sizes = [16, 128], strides = [1, 1]} : vector<16x512xf32> to vector<16x128xf32>
      %102 = arith.negf %101 : vector<16x128xf32>
      %103 = math.exp %102 : vector<16x128xf32>
      %cst_31 = arith.constant 1.000000e+00 : f32
      %104 = vector.broadcast %cst_31 : f32 to vector<16x128xf32>
      %105 = arith.addf %104, %103 : vector<16x128xf32>
      %106 = arith.divf %104, %105 : vector<16x128xf32>
      %107 = vector.extract_strided_slice %100 {offsets = [0, 128], sizes = [16, 128], strides = [1, 1]} : vector<16x512xf32> to vector<16x128xf32>
      %108 = arith.negf %107 : vector<16x128xf32>
      %109 = math.exp %108 : vector<16x128xf32>
      %cst_32 = arith.constant 1.000000e+00 : f32
      %110 = vector.broadcast %cst_32 : f32 to vector<16x128xf32>
      %111 = arith.addf %110, %109 : vector<16x128xf32>
      %112 = arith.divf %110, %111 : vector<16x128xf32>
      %113 = vector.extract_strided_slice %100 {offsets = [0, 256], sizes = [16, 128], strides = [1, 1]} : vector<16x512xf32> to vector<16x128xf32>
      %114 = math.tanh %113 : vector<16x128xf32>
      %115 = vector.extract_strided_slice %100 {offsets = [0, 384], sizes = [16, 128], strides = [1, 1]} : vector<16x512xf32> to vector<16x128xf32>
      %116 = arith.negf %115 : vector<16x128xf32>
      %117 = math.exp %116 : vector<16x128xf32>
      %cst_33 = arith.constant 1.000000e+00 : f32
      %118 = vector.broadcast %cst_33 : f32 to vector<16x128xf32>
      %119 = arith.addf %118, %117 : vector<16x128xf32>
      %120 = arith.divf %118, %119 : vector<16x128xf32>
      %121 = arith.mulf %112, %83 : vector<16x128xf32>
      %122 = arith.mulf %106, %114 : vector<16x128xf32>
      %123 = arith.addf %121, %122 : vector<16x128xf32>
      %124 = math.tanh %123 : vector<16x128xf32>
      %125 = arith.mulf %120, %124 : vector<16x128xf32>
      %c8_i32_34 = arith.constant 8 : i32
      %126 = arith.muli %arg1, %c8_i32_34 : i32
      %127 = arith.addi %126, %c2_i32 : i32
      %128 = arith.sitofp %127 : i32 to f32
      %129 = vector.broadcast %128 : f32 to vector<16x1xf32>
      %130 = arith.cmpf ogt, %3, %129 : vector<16x1xf32>
      %131 = arith.extui %130 : vector<16x1xi1> to vector<16x1xi32>
      %132 = arith.sitofp %131 : vector<16x1xi32> to vector<16x1xf32>
      %133 = vector.broadcast %132 : vector<16x1xf32> to vector<16x128xf32>
      %134 = arith.mulf %125, %133 : vector<16x128xf32>
      %135 = arith.addf %95, %134 : vector<16x128xf32>
      %c3_i32 = arith.constant 3 : i32
      %136 = arith.index_cast %c3_i32 : i32 to index
      %c0_35 = arith.constant 0 : index
      %c0_36 = arith.constant 0 : index
      %137 = vector.load %arg3[%136, %c0_35, %c0_36] : memref<8x16x512xf32, #tpu.memory_space<vmem>>, vector<1x16x512xf32>
      %138 = vector.shape_cast %137 : vector<1x16x512xf32> to vector<16x512xf32>
      %cst_37 = arith.constant dense<0.000000e+00> : vector<16x512xf32>
      %139 = tpu.matmul %125, %12, %cst_37 {dimension_numbers = #tpu.dot_dimension_numbers<[1], [0], [0], [1], [0, 0, 1, 1], [], []>} : vector<16x128xf32>, vector<128x512xf32>, vector<16x512xf32> -> vector<16x512xf32>
      %140 = arith.addf %138, %139 : vector<16x512xf32>
      %141 = vector.extract_strided_slice %140 {offsets = [0, 0], sizes = [16, 128], strides = [1, 1]} : vector<16x512xf32> to vector<16x128xf32>
      %142 = arith.negf %141 : vector<16x128xf32>
      %143 = math.exp %142 : vector<16x128xf32>
      %cst_38 = arith.constant 1.000000e+00 : f32
      %144 = vector.broadcast %cst_38 : f32 to vector<16x128xf32>
      %145 = arith.addf %144, %143 : vector<16x128xf32>
      %146 = arith.divf %144, %145 : vector<16x128xf32>
      %147 = vector.extract_strided_slice %140 {offsets = [0, 128], sizes = [16, 128], strides = [1, 1]} : vector<16x512xf32> to vector<16x128xf32>
      %148 = arith.negf %147 : vector<16x128xf32>
      %149 = math.exp %148 : vector<16x128xf32>
      %cst_39 = arith.constant 1.000000e+00 : f32
      %150 = vector.broadcast %cst_39 : f32 to vector<16x128xf32>
      %151 = arith.addf %150, %149 : vector<16x128xf32>
      %152 = arith.divf %150, %151 : vector<16x128xf32>
      %153 = vector.extract_strided_slice %140 {offsets = [0, 256], sizes = [16, 128], strides = [1, 1]} : vector<16x512xf32> to vector<16x128xf32>
      %154 = math.tanh %153 : vector<16x128xf32>
      %155 = vector.extract_strided_slice %140 {offsets = [0, 384], sizes = [16, 128], strides = [1, 1]} : vector<16x512xf32> to vector<16x128xf32>
      %156 = arith.negf %155 : vector<16x128xf32>
      %157 = math.exp %156 : vector<16x128xf32>
      %cst_40 = arith.constant 1.000000e+00 : f32
      %158 = vector.broadcast %cst_40 : f32 to vector<16x128xf32>
      %159 = arith.addf %158, %157 : vector<16x128xf32>
      %160 = arith.divf %158, %159 : vector<16x128xf32>
      %161 = arith.mulf %152, %123 : vector<16x128xf32>
      %162 = arith.mulf %146, %154 : vector<16x128xf32>
      %163 = arith.addf %161, %162 : vector<16x128xf32>
      %164 = math.tanh %163 : vector<16x128xf32>
      %165 = arith.mulf %160, %164 : vector<16x128xf32>
      %c8_i32_41 = arith.constant 8 : i32
      %166 = arith.muli %arg1, %c8_i32_41 : i32
      %167 = arith.addi %166, %c3_i32 : i32
      %168 = arith.sitofp %167 : i32 to f32
      %169 = vector.broadcast %168 : f32 to vector<16x1xf32>
      %170 = arith.cmpf ogt, %3, %169 : vector<16x1xf32>
      %171 = arith.extui %170 : vector<16x1xi1> to vector<16x1xi32>
      %172 = arith.sitofp %171 : vector<16x1xi32> to vector<16x1xf32>
      %173 = vector.broadcast %172 : vector<16x1xf32> to vector<16x128xf32>
      %174 = arith.mulf %165, %173 : vector<16x128xf32>
      %175 = arith.addf %135, %174 : vector<16x128xf32>
      %c4_i32 = arith.constant 4 : i32
      %176 = arith.index_cast %c4_i32 : i32 to index
      %c0_42 = arith.constant 0 : index
      %c0_43 = arith.constant 0 : index
      %177 = vector.load %arg3[%176, %c0_42, %c0_43] : memref<8x16x512xf32, #tpu.memory_space<vmem>>, vector<1x16x512xf32>
      %178 = vector.shape_cast %177 : vector<1x16x512xf32> to vector<16x512xf32>
      %cst_44 = arith.constant dense<0.000000e+00> : vector<16x512xf32>
      %179 = tpu.matmul %165, %12, %cst_44 {dimension_numbers = #tpu.dot_dimension_numbers<[1], [0], [0], [1], [0, 0, 1, 1], [], []>} : vector<16x128xf32>, vector<128x512xf32>, vector<16x512xf32> -> vector<16x512xf32>
      %180 = arith.addf %178, %179 : vector<16x512xf32>
      %181 = vector.extract_strided_slice %180 {offsets = [0, 0], sizes = [16, 128], strides = [1, 1]} : vector<16x512xf32> to vector<16x128xf32>
      %182 = arith.negf %181 : vector<16x128xf32>
      %183 = math.exp %182 : vector<16x128xf32>
      %cst_45 = arith.constant 1.000000e+00 : f32
      %184 = vector.broadcast %cst_45 : f32 to vector<16x128xf32>
      %185 = arith.addf %184, %183 : vector<16x128xf32>
      %186 = arith.divf %184, %185 : vector<16x128xf32>
      %187 = vector.extract_strided_slice %180 {offsets = [0, 128], sizes = [16, 128], strides = [1, 1]} : vector<16x512xf32> to vector<16x128xf32>
      %188 = arith.negf %187 : vector<16x128xf32>
      %189 = math.exp %188 : vector<16x128xf32>
      %cst_46 = arith.constant 1.000000e+00 : f32
      %190 = vector.broadcast %cst_46 : f32 to vector<16x128xf32>
      %191 = arith.addf %190, %189 : vector<16x128xf32>
      %192 = arith.divf %190, %191 : vector<16x128xf32>
      %193 = vector.extract_strided_slice %180 {offsets = [0, 256], sizes = [16, 128], strides = [1, 1]} : vector<16x512xf32> to vector<16x128xf32>
      %194 = math.tanh %193 : vector<16x128xf32>
      %195 = vector.extract_strided_slice %180 {offsets = [0, 384], sizes = [16, 128], strides = [1, 1]} : vector<16x512xf32> to vector<16x128xf32>
      %196 = arith.negf %195 : vector<16x128xf32>
      %197 = math.exp %196 : vector<16x128xf32>
      %cst_47 = arith.constant 1.000000e+00 : f32
      %198 = vector.broadcast %cst_47 : f32 to vector<16x128xf32>
      %199 = arith.addf %198, %197 : vector<16x128xf32>
      %200 = arith.divf %198, %199 : vector<16x128xf32>
      %201 = arith.mulf %192, %163 : vector<16x128xf32>
      %202 = arith.mulf %186, %194 : vector<16x128xf32>
      %203 = arith.addf %201, %202 : vector<16x128xf32>
      %204 = math.tanh %203 : vector<16x128xf32>
      %205 = arith.mulf %200, %204 : vector<16x128xf32>
      %c8_i32_48 = arith.constant 8 : i32
      %206 = arith.muli %arg1, %c8_i32_48 : i32
      %207 = arith.addi %206, %c4_i32 : i32
      %208 = arith.sitofp %207 : i32 to f32
      %209 = vector.broadcast %208 : f32 to vector<16x1xf32>
      %210 = arith.cmpf ogt, %3, %209 : vector<16x1xf32>
      %211 = arith.extui %210 : vector<16x1xi1> to vector<16x1xi32>
      %212 = arith.sitofp %211 : vector<16x1xi32> to vector<16x1xf32>
      %213 = vector.broadcast %212 : vector<16x1xf32> to vector<16x128xf32>
      %214 = arith.mulf %205, %213 : vector<16x128xf32>
      %215 = arith.addf %175, %214 : vector<16x128xf32>
      %c5_i32 = arith.constant 5 : i32
      %216 = arith.index_cast %c5_i32 : i32 to index
      %c0_49 = arith.constant 0 : index
      %c0_50 = arith.constant 0 : index
      %217 = vector.load %arg3[%216, %c0_49, %c0_50] : memref<8x16x512xf32, #tpu.memory_space<vmem>>, vector<1x16x512xf32>
      %218 = vector.shape_cast %217 : vector<1x16x512xf32> to vector<16x512xf32>
      %cst_51 = arith.constant dense<0.000000e+00> : vector<16x512xf32>
      %219 = tpu.matmul %205, %12, %cst_51 {dimension_numbers = #tpu.dot_dimension_numbers<[1], [0], [0], [1], [0, 0, 1, 1], [], []>} : vector<16x128xf32>, vector<128x512xf32>, vector<16x512xf32> -> vector<16x512xf32>
      %220 = arith.addf %218, %219 : vector<16x512xf32>
      %221 = vector.extract_strided_slice %220 {offsets = [0, 0], sizes = [16, 128], strides = [1, 1]} : vector<16x512xf32> to vector<16x128xf32>
      %222 = arith.negf %221 : vector<16x128xf32>
      %223 = math.exp %222 : vector<16x128xf32>
      %cst_52 = arith.constant 1.000000e+00 : f32
      %224 = vector.broadcast %cst_52 : f32 to vector<16x128xf32>
      %225 = arith.addf %224, %223 : vector<16x128xf32>
      %226 = arith.divf %224, %225 : vector<16x128xf32>
      %227 = vector.extract_strided_slice %220 {offsets = [0, 128], sizes = [16, 128], strides = [1, 1]} : vector<16x512xf32> to vector<16x128xf32>
      %228 = arith.negf %227 : vector<16x128xf32>
      %229 = math.exp %228 : vector<16x128xf32>
      %cst_53 = arith.constant 1.000000e+00 : f32
      %230 = vector.broadcast %cst_53 : f32 to vector<16x128xf32>
      %231 = arith.addf %230, %229 : vector<16x128xf32>
      %232 = arith.divf %230, %231 : vector<16x128xf32>
      %233 = vector.extract_strided_slice %220 {offsets = [0, 256], sizes = [16, 128], strides = [1, 1]} : vector<16x512xf32> to vector<16x128xf32>
      %234 = math.tanh %233 : vector<16x128xf32>
      %235 = vector.extract_strided_slice %220 {offsets = [0, 384], sizes = [16, 128], strides = [1, 1]} : vector<16x512xf32> to vector<16x128xf32>
      %236 = arith.negf %235 : vector<16x128xf32>
      %237 = math.exp %236 : vector<16x128xf32>
      %cst_54 = arith.constant 1.000000e+00 : f32
      %238 = vector.broadcast %cst_54 : f32 to vector<16x128xf32>
      %239 = arith.addf %238, %237 : vector<16x128xf32>
      %240 = arith.divf %238, %239 : vector<16x128xf32>
      %241 = arith.mulf %232, %203 : vector<16x128xf32>
      %242 = arith.mulf %226, %234 : vector<16x128xf32>
      %243 = arith.addf %241, %242 : vector<16x128xf32>
      %244 = math.tanh %243 : vector<16x128xf32>
      %245 = arith.mulf %240, %244 : vector<16x128xf32>
      %c8_i32_55 = arith.constant 8 : i32
      %246 = arith.muli %arg1, %c8_i32_55 : i32
      %247 = arith.addi %246, %c5_i32 : i32
      %248 = arith.sitofp %247 : i32 to f32
      %249 = vector.broadcast %248 : f32 to vector<16x1xf32>
      %250 = arith.cmpf ogt, %3, %249 : vector<16x1xf32>
      %251 = arith.extui %250 : vector<16x1xi1> to vector<16x1xi32>
      %252 = arith.sitofp %251 : vector<16x1xi32> to vector<16x1xf32>
      %253 = vector.broadcast %252 : vector<16x1xf32> to vector<16x128xf32>
      %254 = arith.mulf %245, %253 : vector<16x128xf32>
      %255 = arith.addf %215, %254 : vector<16x128xf32>
      %c6_i32 = arith.constant 6 : i32
      %256 = arith.index_cast %c6_i32 : i32 to index
      %c0_56 = arith.constant 0 : index
      %c0_57 = arith.constant 0 : index
      %257 = vector.load %arg3[%256, %c0_56, %c0_57] : memref<8x16x512xf32, #tpu.memory_space<vmem>>, vector<1x16x512xf32>
      %258 = vector.shape_cast %257 : vector<1x16x512xf32> to vector<16x512xf32>
      %cst_58 = arith.constant dense<0.000000e+00> : vector<16x512xf32>
      %259 = tpu.matmul %245, %12, %cst_58 {dimension_numbers = #tpu.dot_dimension_numbers<[1], [0], [0], [1], [0, 0, 1, 1], [], []>} : vector<16x128xf32>, vector<128x512xf32>, vector<16x512xf32> -> vector<16x512xf32>
      %260 = arith.addf %258, %259 : vector<16x512xf32>
      %261 = vector.extract_strided_slice %260 {offsets = [0, 0], sizes = [16, 128], strides = [1, 1]} : vector<16x512xf32> to vector<16x128xf32>
      %262 = arith.negf %261 : vector<16x128xf32>
      %263 = math.exp %262 : vector<16x128xf32>
      %cst_59 = arith.constant 1.000000e+00 : f32
      %264 = vector.broadcast %cst_59 : f32 to vector<16x128xf32>
      %265 = arith.addf %264, %263 : vector<16x128xf32>
      %266 = arith.divf %264, %265 : vector<16x128xf32>
      %267 = vector.extract_strided_slice %260 {offsets = [0, 128], sizes = [16, 128], strides = [1, 1]} : vector<16x512xf32> to vector<16x128xf32>
      %268 = arith.negf %267 : vector<16x128xf32>
      %269 = math.exp %268 : vector<16x128xf32>
      %cst_60 = arith.constant 1.000000e+00 : f32
      %270 = vector.broadcast %cst_60 : f32 to vector<16x128xf32>
      %271 = arith.addf %270, %269 : vector<16x128xf32>
      %272 = arith.divf %270, %271 : vector<16x128xf32>
      %273 = vector.extract_strided_slice %260 {offsets = [0, 256], sizes = [16, 128], strides = [1, 1]} : vector<16x512xf32> to vector<16x128xf32>
      %274 = math.tanh %273 : vector<16x128xf32>
      %275 = vector.extract_strided_slice %260 {offsets = [0, 384], sizes = [16, 128], strides = [1, 1]} : vector<16x512xf32> to vector<16x128xf32>
      %276 = arith.negf %275 : vector<16x128xf32>
      %277 = math.exp %276 : vector<16x128xf32>
      %cst_61 = arith.constant 1.000000e+00 : f32
      %278 = vector.broadcast %cst_61 : f32 to vector<16x128xf32>
      %279 = arith.addf %278, %277 : vector<16x128xf32>
      %280 = arith.divf %278, %279 : vector<16x128xf32>
      %281 = arith.mulf %272, %243 : vector<16x128xf32>
      %282 = arith.mulf %266, %274 : vector<16x128xf32>
      %283 = arith.addf %281, %282 : vector<16x128xf32>
      %284 = math.tanh %283 : vector<16x128xf32>
      %285 = arith.mulf %280, %284 : vector<16x128xf32>
      %c8_i32_62 = arith.constant 8 : i32
      %286 = arith.muli %arg1, %c8_i32_62 : i32
      %287 = arith.addi %286, %c6_i32 : i32
      %288 = arith.sitofp %287 : i32 to f32
      %289 = vector.broadcast %288 : f32 to vector<16x1xf32>
      %290 = arith.cmpf ogt, %3, %289 : vector<16x1xf32>
      %291 = arith.extui %290 : vector<16x1xi1> to vector<16x1xi32>
      %292 = arith.sitofp %291 : vector<16x1xi32> to vector<16x1xf32>
      %293 = vector.broadcast %292 : vector<16x1xf32> to vector<16x128xf32>
      %294 = arith.mulf %285, %293 : vector<16x128xf32>
      %295 = arith.addf %255, %294 : vector<16x128xf32>
      %c7_i32 = arith.constant 7 : i32
      %296 = arith.index_cast %c7_i32 : i32 to index
      %c0_63 = arith.constant 0 : index
      %c0_64 = arith.constant 0 : index
      %297 = vector.load %arg3[%296, %c0_63, %c0_64] : memref<8x16x512xf32, #tpu.memory_space<vmem>>, vector<1x16x512xf32>
      %298 = vector.shape_cast %297 : vector<1x16x512xf32> to vector<16x512xf32>
      %cst_65 = arith.constant dense<0.000000e+00> : vector<16x512xf32>
      %299 = tpu.matmul %285, %12, %cst_65 {dimension_numbers = #tpu.dot_dimension_numbers<[1], [0], [0], [1], [0, 0, 1, 1], [], []>} : vector<16x128xf32>, vector<128x512xf32>, vector<16x512xf32> -> vector<16x512xf32>
      %300 = arith.addf %298, %299 : vector<16x512xf32>
      %301 = vector.extract_strided_slice %300 {offsets = [0, 0], sizes = [16, 128], strides = [1, 1]} : vector<16x512xf32> to vector<16x128xf32>
      %302 = arith.negf %301 : vector<16x128xf32>
      %303 = math.exp %302 : vector<16x128xf32>
      %cst_66 = arith.constant 1.000000e+00 : f32
      %304 = vector.broadcast %cst_66 : f32 to vector<16x128xf32>
      %305 = arith.addf %304, %303 : vector<16x128xf32>
      %306 = arith.divf %304, %305 : vector<16x128xf32>
      %307 = vector.extract_strided_slice %300 {offsets = [0, 128], sizes = [16, 128], strides = [1, 1]} : vector<16x512xf32> to vector<16x128xf32>
      %308 = arith.negf %307 : vector<16x128xf32>
      %309 = math.exp %308 : vector<16x128xf32>
      %cst_67 = arith.constant 1.000000e+00 : f32
      %310 = vector.broadcast %cst_67 : f32 to vector<16x128xf32>
      %311 = arith.addf %310, %309 : vector<16x128xf32>
      %312 = arith.divf %310, %311 : vector<16x128xf32>
      %313 = vector.extract_strided_slice %300 {offsets = [0, 256], sizes = [16, 128], strides = [1, 1]} : vector<16x512xf32> to vector<16x128xf32>
      %314 = math.tanh %313 : vector<16x128xf32>
      %315 = vector.extract_strided_slice %300 {offsets = [0, 384], sizes = [16, 128], strides = [1, 1]} : vector<16x512xf32> to vector<16x128xf32>
      %316 = arith.negf %315 : vector<16x128xf32>
      %317 = math.exp %316 : vector<16x128xf32>
      %cst_68 = arith.constant 1.000000e+00 : f32
      %318 = vector.broadcast %cst_68 : f32 to vector<16x128xf32>
      %319 = arith.addf %318, %317 : vector<16x128xf32>
      %320 = arith.divf %318, %319 : vector<16x128xf32>
      %321 = arith.mulf %312, %283 : vector<16x128xf32>
      %322 = arith.mulf %306, %314 : vector<16x128xf32>
      %323 = arith.addf %321, %322 : vector<16x128xf32>
      %324 = math.tanh %323 : vector<16x128xf32>
      %325 = arith.mulf %320, %324 : vector<16x128xf32>
      %c8_i32_69 = arith.constant 8 : i32
      %326 = arith.muli %arg1, %c8_i32_69 : i32
      %327 = arith.addi %326, %c7_i32 : i32
      %328 = arith.sitofp %327 : i32 to f32
      %329 = vector.broadcast %328 : f32 to vector<16x1xf32>
      %330 = arith.cmpf ogt, %3, %329 : vector<16x1xf32>
      %331 = arith.extui %330 : vector<16x1xi1> to vector<16x1xi32>
      %332 = arith.sitofp %331 : vector<16x1xi32> to vector<16x1xf32>
      %333 = vector.broadcast %332 : vector<16x1xf32> to vector<16x128xf32>
      %334 = arith.mulf %325, %333 : vector<16x128xf32>
      %335 = arith.addf %295, %334 : vector<16x128xf32>
      %c8_i32_70 = arith.constant 8 : i32
      %c0_71 = arith.constant 0 : index
      %c0_72 = arith.constant 0 : index
      %336 = vector.load %arg8[%c0_71, %c0_72] : memref<16x128xf32, #tpu.memory_space<vmem>>, vector<16x128xf32>
      tpu.vector_store %arg8[%c0_71, %c0_72], %325 {strides = array<i32>} : memref<16x128xf32, #tpu.memory_space<vmem>>, vector<16x128xf32>,
      %c0_73 = arith.constant 0 : index
      %c0_74 = arith.constant 0 : index
      %337 = vector.load %arg9[%c0_73, %c0_74] : memref<16x128xf32, #tpu.memory_space<vmem>>, vector<16x128xf32>
      tpu.vector_store %arg9[%c0_73, %c0_74], %323 {strides = array<i32>} : memref<16x128xf32, #tpu.memory_space<vmem>>, vector<16x128xf32>,
      %c0_75 = arith.constant 0 : index
      %c0_76 = arith.constant 0 : index
      %338 = vector.load %arg10[%c0_75, %c0_76] : memref<16x128xf32, #tpu.memory_space<vmem>>, vector<16x128xf32>
      tpu.vector_store %arg10[%c0_75, %c0_76], %335 {strides = array<i32>} : memref<16x128xf32, #tpu.memory_space<vmem>>, vector<16x128xf32>,
    } else {
    }
    %c0_i32_4 = arith.constant 0 : i32
    %9 = arith.cmpi eq, %arg1, %c0_i32_4 : i32
    %10 = arith.extui %9 : i1 to i32
    %c0_i32_5 = arith.constant 0 : i32
    %11 = arith.cmpi ne, %10, %c0_i32_5 : i32
    scf.if %11 {
      %c0_6 = arith.constant 0 : index
      %c0_7 = arith.constant 0 : index
      %12 = vector.load %arg10[%c0_6, %c0_7] : memref<16x128xf32, #tpu.memory_space<vmem>>, vector<16x128xf32>
      %cst = arith.constant 1.000000e+00 : f32
      %13 = vector.broadcast %cst : f32 to vector<16x1xf32>
      %14 = arith.maximumf %3, %13 : vector<16x1xf32>
      %15 = vector.broadcast %14 : vector<16x1xf32> to vector<16x128xf32>
      %16 = arith.divf %12, %15 : vector<16x128xf32>
      %17 = vector.extract_strided_slice %16 {offsets = [0, 0], sizes = [8, 128], strides = [1, 1]} : vector<16x128xf32> to vector<8x128xf32>
      %18 = vector.extract_strided_slice %16 {offsets = [8, 0], sizes = [8, 128], strides = [1, 1]} : vector<16x128xf32> to vector<8x128xf32>
      %19 = arith.subf %17, %18 : vector<8x128xf32>
      %20 = math.absf %19 : vector<8x128xf32>
      %cst_8 = arith.constant dense<0.000000e+00> : vector<8xf32>
      %21 = vector.multi_reduction <add>, %20, %cst_8 [1] : vector<8x128xf32> to vector<8xf32>
      %22 = vector.shape_cast %21 : vector<8xf32> to vector<8x1xf32>
      %cst_9 = arith.constant 0.000000e+00 : f32
      %23 = vector.broadcast %cst_9 : f32 to vector<8x1xf32>
      %24 = arith.subf %23, %22 : vector<8x1xf32>
      %25 = math.exp %24 : vector<8x1xf32>
      %c0_10 = arith.constant 0 : index
      %c0_11 = arith.constant 0 : index
      %26 = vector.load %arg6[%c0_10, %c0_11] : memref<8x1xf32, #tpu.memory_space<vmem>>, vector<8x1xf32>
      tpu.vector_store %arg6[%c0_10, %c0_11], %25 {strides = array<i32>} : memref<8x1xf32, #tpu.memory_space<vmem>>, vector<8x1xf32>,
    } else {
    }
    return
  }
  func.func @transform_0(%arg0: i32, %arg1: i32, %arg2: memref<1xi32, #tpu.memory_space<smem>>) -> (i32, i32, i32) {
    %c0_i32 = arith.constant 0 : i32
    %c0_i32_0 = arith.constant 0 : i32
    return %arg1, %arg0, %c0_i32 : i32, i32, i32
  }
  func.func @transform_1(%arg0: i32, %arg1: i32, %arg2: memref<1xi32, #tpu.memory_space<smem>>) -> (i32, i32) {
    %c0_i32 = arith.constant 0 : i32
    %c0_i32_0 = arith.constant 0 : i32
    return %arg0, %c0_i32 : i32, i32
  }
  func.func @transform_3(%arg0: i32, %arg1: i32, %arg2: memref<1xi32, #tpu.memory_space<smem>>) -> (i32, i32) {
    %c0_i32 = arith.constant 0 : i32
    %c0_i32_0 = arith.constant 0 : i32
    return %arg0, %c0_i32 : i32, i32
  }
}

</mosaic_0001>

<bundles_post_ra>
// kernel: tpu_custom_call.1
= control target key start
LH: loop header
LB: loop body
LE: loop exit
PB: predicated region body
PF: predicated region fallthrough
CT: control target
= control target key end

     0   :  { %10 = vsyncpa [#allocation9], 0  ;;  %s3045_s15 = smov [#allocation8]   ;;  %s3606_s0 = inlined_call_operand.<no memory space> [shape: s32[1], index: 0, kind: input, shape index: {}]   ;;  %s3607_s1 = inlined_call_operand.hbm [shape: f32[8,16,512], index: 1, kind: input, shape index: {}]   ;;  %s3608_s2 = inlined_call_operand.vmem [shape: f32[16,1], index: 2, kind: input, shape index: {}]   ;;  %s3609_s3 = inlined_call_operand.hbm [shape: f32[128,512], index: 3, kind: input, shape index: {}]   ;;  %s3610_s4 = inlined_call_operand.vmem [shape: f32[8,1], index: 4, kind: output, shape index: {}]  }
   0x1   :  { %s16_s16 = sshll.u32 %s3045_s15, 4  ;;  %s2997_s19 = scalar_lea.hbm %s3607_s1, 8192  ;;  %s17_s16 = int_to_ptr.vmem [resolvable:$true] %s16_s16 }
   0x2   :  { %p2998_p0 = scmp.ne.s32.totalorder %s3607_s1, %s2997_s19  ;;  %p3001_p1 = scmp.lt.u32.totalorder %s2997_s19, %s3607_s1 }
   0x4   :  { %p3003_p2 = pnand %p3001_p1, %p2998_p0 }
   0x6   :  { %3006 = shalt.err (!%p3003_p2)
}
   0x7   :  { %s3007_s24 = scalar_lea.vmem %s17_s16, 8192  ;;  %p3012_p4 = scmp.lt.s32.totalorder %s17_s16, %s17_s16 }
   0x8   :  { %p3008_p3 = scmp.ne.s32.totalorder %s17_s16, %s3007_s24  ;;  %p3013_p5 = scmp.lt.s32.totalorder %s3007_s24, %s3007_s24 }
   0xa   :  { %p3014_p6 = por %p3013_p5, %p3012_p4 }
   0xc   :  { %p3015_p7 = pnand %p3014_p6, %p3008_p3 }
   0xe   :  { %3018 = shalt.err (!%p3015_p7)
}
   0xf   :  { %s3046_s25 = smov 512   ;;  %s3047_s26 = smov 32  }
  0x10   :  { %22 = dma.hbm_to_vmem [thread:$0]  %s3607_s1, 8192, %s17_s16, [#allocation9], %s3046_s25, %s3046_s25, %s3047_s26  }
  0x11   :  { %3041 = dma.done.wait [#allocation9], 8192  }
  0x12   :  { %3042 = vsyncadd [#allocation9], 4294959104 }
  0x13   :  { %s3048_s29 = smov [#allocation2]   ;;  %s3019_s7 = scalar_lea.hbm %s3609_s3, 8192 }
  0x14   :  { %s39_s30 = sshll.u32 %s3048_s29, 4  ;;  %p3020_p8 = scmp.ne.s32.totalorder %s3609_s3, %s3019_s7  ;;  %s40_s30 = int_to_ptr.vmem [resolvable:$true] %s39_s30 }
  0x15   :  { %p3023_p9 = scmp.lt.u32.totalorder %s3019_s7, %s3609_s3 }
  0x17   :  { %p3025_p10 = pnand %p3023_p9, %p3020_p8 }
  0x19   :  { %3028 = shalt.err (!%p3025_p10)  }
  0x1a   :  { %s3029_s1 = scalar_lea.vmem %s40_s30, 8192  ;;  %p3034_p12 = scmp.lt.s32.totalorder %s40_s30, %s40_s30 }
  0x1b   :  { %p3030_p11 = scmp.ne.s32.totalorder %s40_s30, %s3029_s1  ;;  %p3035_p13 = scmp.lt.s32.totalorder %s3029_s1, %s3029_s1 }
  0x1d   :  { %p3036_p0 = por %p3035_p13, %p3034_p12 }
  0x1f   :  { %p3037_p1 = pnand %p3036_p0, %p3030_p11 }
  0x21   :  { %3040 = shalt.err (!%p3037_p1)  }
  0x22   :  { %42 = dma.hbm_to_vmem [thread:$0]  %s3609_s3, 8192, %s40_s30, [#allocation10] }
  0x23   :  { %3043 = dma.done.wait [#allocation10], 8192 }
  0x24   :  { %3044 = vsyncadd [#allocation10], 4294959104  ;;  %v3105_v0 = vld [vmem:[%s3608_s2] sm:$0xff]  ;;  %v3110_v1 = vld [vmem:[%s3608_s2 + $0x8] sm:$0xff]  ;;  %v3049_v2 = vmov 0.0   ;;  %p2107_p2 = scmp.le.s32.totalorder %s3606_s0, 0 }
  0x25   :  { %47 = vst [vmem:[#allocation3] sm:$0xff] %v3049_v2  ;;  %48 = vst [vmem:[#allocation3 + $0x8] sm:$0xff] %v3049_v2  ;;  %v62_v3 = vld [vmem:[#allocation2 + $0x8] sm:$0xff] (!%p2107_p2)  ;;  %v61_v5 = vld [vmem:[#allocation2] sm:$0xff] (!%p2107_p2)  ;;  %vm351_vm0 = vcmp.gt.f32.partialorder (!%p2107_p2), %v3105_v0, 0.0  ;;  %v3050_v10 = vmov (!%p2107_p2), 0.0  }
  0x26   :  { %49 = vst [vmem:[#allocation4] sm:$0xff] %v3049_v2  ;;  %50 = vst [vmem:[#allocation4 + $0x8] sm:$0xff] %v3049_v2  ;;  %60 = sbr.rel (%p2107_p2) target bundleno = 2146 (0x862), region = 26  ;;  %v66_v4 = vld [vmem:[#allocation2 + $0x28] sm:$0xff] (!%p2107_p2)  ;;  %v65_v7 = vld [vmem:[#allocation2 + $0x20] sm:$0xff] (!%p2107_p2)  ;;  %203 = vmatprep.mubr.f32.mxu0 (!%p2107_p2), %v3050_v10  ;;  %280 = vmatprep.mubr.f32.mxu1 (!%p2107_p2), %v3050_v10  ;;  %vm352_vm1 = vcmp.gt.f32.partialorder (!%p2107_p2), %v3110_v1, 0.0 }
  0x27   :  { %51 = vst [vmem:[#allocation5] sm:$0xff] %v3049_v2  ;;  %52 = vst [vmem:[#allocation5 + $0x8] sm:$0xff] %v3049_v2  ;;  %v3116_v6 = vpack.c.bf16 (!%p2107_p2), %v66_v4, %v62_v3  ;;  %v70_v8 = vld [vmem:[#allocation2 + $0x48] sm:$0xff] (!%p2107_p2)  ;;  %v2114_v11 = vsel (!%p2107_p2), %vm351_vm0, 1.0, %v3050_v10  ;;  %v3122_v12 = vpack.c.bf16 (!%p2107_p2), %v65_v7, %v61_v5  ;;  %v69_v14 = vld [vmem:[#allocation2 + $0x40] sm:$0xff] (!%p2107_p2)  ;;  %v3051_v17 = vmov (!%p2107_p2), 0  }
  0x28   :  { %v74_v9 = vld [vmem:[#allocation2 + $0x68] sm:$0xff] (!%p2107_p2)  ;;  %v73_v15 = vld [vmem:[#allocation2 + $0x60] sm:$0xff] (!%p2107_p2)  ;;  %2692 = vset.pattern.permute.xlu0 (!%p2107_p2), %v3051_v17  ;;  %v2115_v18 = vsel (!%p2107_p2), %vm352_vm1, 1.0, %v3050_v10  ;;  %2703 = vset.pattern.permute.xlu1 (!%p2107_p2), %v3051_v17  ;;  %v64_v26 = vld [vmem:[#allocation2 + $0x18] sm:$0xff] (!%p2107_p2)  ;;  %vm593_vm2 = vcmp.gt.f32.partialorder (!%p2107_p2), %v3105_v0, 1.0  ;;  %vm594_vm3 = vcmp.gt.f32.partialorder (!%p2107_p2), %v3110_v1, 1.0 }
  0x29   :  { %v3124_v13 = vpack.c.bf16 (!%p2107_p2), %v74_v9, %v70_v8  ;;  %v78_v16 = vld [vmem:[#allocation2 + $0x88] sm:$0xff] (!%p2107_p2)  ;;  %2173 = vmatprep.subr.bf16.mxu0 (!%p2107_p2), %v3116_v6  ;;  %v2693_v20 = vpack.i.bf16 (!%p2107_p2), %v2115_v18, %v2114_v11  ;;  %v3129_v21 = vpack.c.bf16 (!%p2107_p2), %v73_v15, %v69_v14  ;;  %v77_v22 = vld [vmem:[#allocation2 + $0x80] sm:$0xff] (!%p2107_p2)  ;;  %v68_v27 = vld [vmem:[#allocation2 + $0x38] sm:$0xff] (!%p2107_p2)  ;;  %vm835_vm4 = vcmp.gt.f32.partialorder (!%p2107_p2), %v3105_v0, 2.0 }
  0x2a   :  { %v82_v19 = vld [vmem:[#allocation2 + $0xa8] sm:$0xff] (!%p2107_p2)  ;;  %2175 = vmatpush1.bf16.msra.mxu0 (!%p2107_p2), %v3122_v12  ;;  %v81_v23 = vld [vmem:[#allocation2 + $0xa0] sm:$0xff] (!%p2107_p2)  ;;  %v3134_v29 = vpack.c.bf16 (!%p2107_p2), %v68_v27, %v64_v26  ;;  %v63_v30 = vld [vmem:[#allocation2 + $0x10] sm:$0xff] (!%p2107_p2)  ;;  %vm836_vm5 = vcmp.gt.f32.partialorder (!%p2107_p2), %v3110_v1, 2.0  ;;  %vm1077_vm6 = vcmp.gt.f32.partialorder (!%p2107_p2), %v3105_v0, 3.0  ;;  %vm1078_vm7 = vcmp.gt.f32.partialorder (!%p2107_p2), %v3110_v1, 3.0 }
  0x2b   :  { %2177 = vmatprep.subr.bf16.mxu0 (!%p2107_p2), %v3124_v13  ;;  %v3132_v24 = vpack.c.bf16 (!%p2107_p2), %v82_v19, %v78_v16  ;;  %v86_v25 = vld [vmem:[#allocation2 + $0xc8] sm:$0xff] (!%p2107_p2)  ;;  %2694 = vperm.xlu0 (!%p2107_p2), %2692, %v2693_v20   ;;  %v67_v31 = vld [vmem:[#allocation2 + $0x30] sm:$0xff] (!%p2107_p2)  ;;  %v3139_v33 = vpack.c.bf16 (!%p2107_p2), %v81_v23, %v77_v22  ;;  %v72_v34 = vld [vmem:[#allocation2 + $0x58] sm:$0xff] (!%p2107_p2)  ;;  %vm1319_vm8 = vcmp.gt.f32.partialorder (!%p2107_p2), %v3105_v0, 4.0  ;;  %vm1320_vm9 = vcmp.gt.f32.partialorder (!%p2107_p2), %v3110_v1, 4.0 }
  0x2c   :  { %v90_v28 = vld [vmem:[#allocation2 + $0xe8] sm:$0xff] (!%p2107_p2)  ;;  %v3136_v32 = vpack.c.bf16 (!%p2107_p2), %v67_v31, %v63_v30  ;;  %2205 = vmatprep.subr.bf16.mxu1 (!%p2107_p2), %v3134_v29  ;;  %v76_v35 = vld [vmem:[#allocation2 + $0x78] sm:$0xff] (!%p2107_p2)  ;;  %v71_v36 = vld [vmem:[#allocation2 + $0x50] sm:$0xff] (!%p2107_p2)  ;;  %vm1561_vm10 = vcmp.gt.f32.partialorder (!%p2107_p2), %v3105_v0, 5.0  ;;  %vm1562_vm11 = vcmp.gt.f32.partialorder (!%p2107_p2), %v3110_v1, 5.0  ;;  %vm1803_vm12 = vcmp.gt.f32.partialorder (!%p2107_p2), %v3105_v0, 6.0 }
  0x2d   :  { %v3143_v37 = vpack.c.bf16 %v90_v28, %v86_v25  ;;  %v85_v38 = vld [vmem:[#allocation2 + $0xc0] sm:$0xff]  ;;  %v3146_v40 = vpack.c.bf16 %v76_v35, %v72_v34  ;;  %v75_v41 = vld [vmem:[#allocation2 + $0x70] sm:$0xff]  ;;  %v94_v42 = vld [vmem:[#allocation2 + $0x108] sm:$0xff]  ;;  %vm1804_vm13 = vcmp.gt.f32.partialorder %v3110_v1, 6.0  ;;  %vm2045_vm14 = vcmp.gt.f32.partialorder %v3105_v0, 7.0 }
  0x2e   :  { %2179 = vmatpush1.bf16.msra.mxu0 %v3129_v21  ;;  %v89_v39 = vld [vmem:[#allocation2 + $0xe0] sm:$0xff]  ;;  %2207 = vmatpush1.bf16.msra.mxu1 %v3136_v32  ;;  %v98_v43 = vld [vmem:[#allocation2 + $0x128] sm:$0xff]  ;;  %v3148_v44 = vpack.c.bf16 %v75_v41, %v71_v36  ;;  %v80_v45 = vld [vmem:[#allocation2 + $0x98] sm:$0xff]  ;;  %vm2046_vm15 = vcmp.gt.f32.partialorder %v3110_v1, 7.0 }
  0x2f   :  { %2181 = vmatprep.subr.bf16.mxu0 %v3132_v24  ;;  %2209 = vmatprep.subr.bf16.mxu1 %v3146_v40  ;;  %v84_v46 = vld [vmem:[#allocation2 + $0xb8] sm:$0xff]  ;;  %v79_v47 = vld [vmem:[#allocation2 + $0x90] sm:$0xff]  ;;  %v3152_v49 = vpack.c.bf16 %v89_v39, %v85_v38  ;;  %v93_v50 = vld [vmem:[#allocation2 + $0x100] sm:$0xff]  ;;  %v3157_v53 = vpack.c.bf16 %v98_v43, %v94_v42 }
  0x30   :  { %v83_v48 = vld [vmem:[#allocation2 + $0xb0] sm:$0xff]  ;;  %v97_v51 = vld [vmem:[#allocation2 + $0x120] sm:$0xff]  ;;  %v3154_v52 = vpack.c.bf16 %v84_v46, %v80_v45  ;;  %v102_v54 = vld [vmem:[#allocation2 + $0x148] sm:$0xff] }
  0x31   :  { %v3160_v55 = vpack.c.bf16 %v83_v48, %v79_v47  ;;  %v88_v56 = vld [vmem:[#allocation2 + $0xd8] sm:$0xff]  ;;  %v106_v58 = vld [vmem:[#allocation2 + $0x168] sm:$0xff]  ;;  %v87_v60 = vld [vmem:[#allocation2 + $0xd0] sm:$0xff]  ;;  %v3166_v62 = vpack.c.bf16 %v97_v51, %v93_v50 }
  0x32   :  { %2183 = vmatpush1.bf16.msra.mxu0 %v3139_v33  ;;  %2211 = vmatpush1.bf16.msra.mxu1 %v3148_v44  ;;  %v92_v57 = vld [vmem:[#allocation2 + $0xf8] sm:$0xff]  ;;  %v91_v61 = vld [vmem:[#allocation2 + $0xf0] sm:$0xff]  ;;  %v3169_v3 = vpack.c.bf16 %v106_v58, %v102_v54  ;;  %v101_v4 = vld [vmem:[#allocation2 + $0x140] sm:$0xff] }
  0x33   :  { %2185 = vmatprep.subr.bf16.mxu0 %v3143_v37  ;;  %2213 = vmatprep.subr.bf16.mxu1 %v3154_v52  ;;  %v3163_v59 = vpack.c.bf16 %v92_v57, %v88_v56  ;;  %v96_v63 = vld [vmem:[#allocation2 + $0x118] sm:$0xff]  ;;  %v105_v5 = vld [vmem:[#allocation2 + $0x160] sm:$0xff]  ;;  %v110_v7 = vld [vmem:[#allocation2 + $0x188] sm:$0xff]  ;;  %v3172_v8 = vpack.c.bf16 %v91_v61, %v87_v60  ;;  %v2122_v61 = vsel %vm593_vm2, 1.0, %v3050_v10 }
  0x34   :  { %v100_v2 = vld [vmem:[#allocation2 + $0x138] sm:$0xff]  ;;  %v114_v9 = vld [vmem:[#allocation2 + $0x1a8] sm:$0xff]  ;;  %v95_v14 = vld [vmem:[#allocation2 + $0x110] sm:$0xff]  ;;  %v3178_v18 = vpack.c.bf16 %v105_v5, %v101_v4 }
  0x35   :  { %v3175_v11 = vpack.c.bf16 %v100_v2, %v96_v63  ;;  %v99_v15 = vld [vmem:[#allocation2 + $0x130] sm:$0xff]  ;;  %v104_v16 = vld [vmem:[#allocation2 + $0x158] sm:$0xff]  ;;  %v3181_v19 = vpack.c.bf16 %v114_v9, %v110_v7  ;;  %v109_v20 = vld [vmem:[#allocation2 + $0x180] sm:$0xff]  ;;  %v2123_v63 = vsel %vm594_vm3, 1.0, %v3050_v10 }
  0x36   :  { %2187 = vmatpush1.bf16.msra.mxu0 %v3152_v49  ;;  %2215 = vmatpush1.bf16.msra.mxu1 %v3160_v55  ;;  %v108_v17 = vld [vmem:[#allocation2 + $0x178] sm:$0xff]  ;;  %v113_v22 = vld [vmem:[#allocation2 + $0x1a0] sm:$0xff]  ;;  %v118_v23 = vld [vmem:[#allocation2 + $0x1c8] sm:$0xff]  ;;  %v3184_v25 = vpack.c.bf16 %v99_v15, %v95_v14  ;;  %v2698_v2 = vpack.i.bf16 %v2123_v63, %v2122_v61 }
  0x37   :  { %2189 = vmatprep.subr.bf16.mxu0 %v3157_v53  ;;  %2217 = vmatprep.subr.bf16.mxu1 %v3163_v59  ;;  %v122_v26 = vld [vmem:[#allocation2 + $0x1e8] sm:$0xff]  ;;  %v3187_v27 = vpack.c.bf16 %v108_v17, %v104_v16  ;;  %v103_v28 = vld [vmem:[#allocation2 + $0x150] sm:$0xff]  ;;  %v112_v31 = vld [vmem:[#allocation2 + $0x198] sm:$0xff]  ;;  %v3190_v35 = vpack.c.bf16 %v113_v22, %v109_v20 }
  0x38   :  { %v107_v30 = vld [vmem:[#allocation2 + $0x170] sm:$0xff]  ;;  %v116_v34 = vld [vmem:[#allocation2 + $0x1b8] sm:$0xff]  ;;  %v3193_v36 = vpack.c.bf16 %v122_v26, %v118_v23  ;;  %v117_v38 = vld [vmem:[#allocation2 + $0x1c0] sm:$0xff]  ;;  %2699 = vperm.xlu0 %2692, %v2698_v2  }
  0x39   :  { %v121_v39 = vld [vmem:[#allocation2 + $0x1e0] sm:$0xff]  ;;  %v3196_v41 = vpack.c.bf16 %v107_v30, %v103_v28  ;;  %v3199_v42 = vpack.c.bf16 %v116_v34, %v112_v31  ;;  %v111_v43 = vld [vmem:[#allocation2 + $0x190] sm:$0xff]  ;;  %v120_v46 = vld [vmem:[#allocation2 + $0x1d8] sm:$0xff] }
  0x3a   :  { %2191 = vmatpush1.bf16.msra.mxu0 %v3166_v62  ;;  %2219 = vmatpush1.bf16.msra.mxu1 %v3172_v8  ;;  %v115_v45 = vld [vmem:[#allocation2 + $0x1b0] sm:$0xff]  ;;  %v124_v47 = vld [vmem:[#allocation2 + $0x1f8] sm:$0xff]  ;;  %v3202_v48 = vpack.c.bf16 %v121_v39, %v117_v38  ;;  %v125_v57 = vld [vmem:[#allocation3] sm:$0xff] }
  0x3b   :  { %2193 = vmatprep.subr.bf16.mxu0 %v3169_v3  ;;  %2221 = vmatprep.subr.bf16.mxu1 %v3175_v11  ;;  %v3206_v50 = vpack.c.bf16 %v115_v45, %v111_v43  ;;  %v3209_v51 = vpack.c.bf16 %v124_v47, %v120_v46  ;;  %v119_v54 = vld [vmem:[#allocation2 + $0x1d0] sm:$0xff]  ;;  %v126_v60 = vld [vmem:[#allocation3 + $0x8] sm:$0xff]  ;;  %v132_v5 = vld [vmem:[#allocation8 + $0x8] sm:$0xff] }
  0x3c   :  { %v123_v56 = vld [vmem:[#allocation2 + $0x1f0] sm:$0xff]  ;;  %v136_v20 = vld [vmem:[#allocation8 + $0x28] sm:$0xff]  ;;  %v134_v26 = vld [vmem:[#allocation8 + $0x18] sm:$0xff] }
  0x3d   :  { %v3213_v58 = vpack.c.bf16 %v123_v56, %v119_v54  ;;  %v131_v4 = vld [vmem:[#allocation8] sm:$0xff]  ;;  %v138_v46 = vld [vmem:[#allocation8 + $0x38] sm:$0xff]  ;;  %v133_v47 = vld [vmem:[#allocation8 + $0x10] sm:$0xff] }
  0x3e   :  { %2195 = vmatpush1.bf16.msra.mxu0 %v3178_v18  ;;  %2223 = vmatpush1.bf16.msra.mxu1 %v3184_v25  ;;  %v135_v16 = vld [vmem:[#allocation8 + $0x20] sm:$0xff]  ;;  %v137_v63 = vld [vmem:[#allocation8 + $0x30] sm:$0xff] }
  0x3f   :  { %2197 = vmatprep.subr.bf16.mxu0 %v3181_v19  ;;  %2225 = vmatprep.subr.bf16.mxu1 %v3187_v27 }
  0x42   :  { %2199 = vmatpush1.bf16.msra.mxu0 %v3190_v35  ;;  %2227 = vmatpush1.bf16.msra.mxu1 %v3196_v41 }
  0x43   :  { %2201 = vmatprep.subr.bf16.mxu0 %v3193_v36  ;;  %2229 = vmatprep.subr.bf16.mxu1 %v3199_v42 }
  0x46   :  { %2203 = vmatpush1.bf16.msra.mxu0 %v3202_v48  ;;  %2231 = vmatpush1.bf16.msra.mxu1 %v3206_v50 }
  0x47   :  { %2237 = vmatprep.subr.bf16.mxu0 %v3116_v6  ;;  %2233 = vmatprep.subr.bf16.mxu1 %v3209_v51 }
  0x49   :  { %204 = vmatmul.mubr.f32.vlgmr.msra.gmra.mrb[0].mxu0 %v125_v57 }
  0x4a   :  { %209 = vmatprep.mubr.f32.mxu0 %v3050_v10  ;;  %2239 = vmatpush1.bf16.msra.mxu0 %v3122_v12 }
  0x4b   :  { %2235 = vmatpush1.bf16.msra.mxu1 %v3213_v58  ;;  %2241 = vmatprep.subr.bf16.mxu0 %v3124_v13 }
  0x4c   :  { %2269 = vmatprep.subr.bf16.mxu1 %v3134_v29 }
  0x4d   :  { %210 = vmatmul.mubr.f32.gmra.mrb[2].mxu0 %v126_v60 }
  0x4e   :  { %281 = vmatmul.mubr.f32.vlgmr.msra.gmra.mrb[0].mxu1 %v125_v57  ;;  %2243 = vmatpush1.bf16.msra.mxu0 %v3129_v21 }
  0x4f   :  { %286 = vmatprep.mubr.f32.mxu1 %v3050_v10  ;;  %2271 = vmatpush1.bf16.msra.mxu1 %v3136_v32 }
  0x50   :  { %2273 = vmatprep.subr.bf16.mxu1 %v3146_v40  ;;  %2245 = vmatprep.subr.bf16.mxu0 %v3132_v24 }
  0x51   :  { %444 = vmatprep.mubr.f32.mxu0 %v3050_v10 }
  0x52   :  { %287 = vmatmul.mubr.f32.gmra.mrb[2].mxu1 %v126_v60  ;;  %2247 = vmatpush1.bf16.msra.mxu0 %v3139_v33 }
  0x53   :  { %2275 = vmatpush1.bf16.msra.mxu1 %v3148_v44  ;;  %2249 = vmatprep.subr.bf16.mxu0 %v3143_v37 }
  0x54   :  { %2277 = vmatprep.subr.bf16.mxu1 %v3154_v52  ;;  %521 = vmatprep.mubr.f32.mxu1 %v3050_v10 }
  0x56   :  { %2251 = vmatpush1.bf16.msra.mxu0 %v3152_v49 }
  0x57   :  { %2279 = vmatpush1.bf16.msra.mxu1 %v3160_v55  ;;  %2253 = vmatprep.subr.bf16.mxu0 %v3157_v53 }
  0x58   :  { %2281 = vmatprep.subr.bf16.mxu1 %v3163_v59 }
  0x5a   :  { %2255 = vmatpush1.bf16.msra.mxu0 %v3166_v62 }
  0x5b   :  { %2283 = vmatpush1.bf16.msra.mxu1 %v3172_v8  ;;  %2257 = vmatprep.subr.bf16.mxu0 %v3169_v3 }
  0x5c   :  { %2285 = vmatprep.subr.bf16.mxu1 %v3175_v11 }
  0x5e   :  { %2259 = vmatpush1.bf16.msra.mxu0 %v3178_v18 }
  0x5f   :  { %2287 = vmatpush1.bf16.msra.mxu1 %v3184_v25  ;;  %2261 = vmatprep.subr.bf16.mxu0 %v3181_v19 }
  0x60   :  { %2289 = vmatprep.subr.bf16.mxu1 %v3187_v27 }
  0x62   :  { %2263 = vmatpush1.bf16.msra.mxu0 %v3190_v35 }
  0x63   :  { %2291 = vmatpush1.bf16.msra.mxu1 %v3196_v41  ;;  %2265 = vmatprep.subr.bf16.mxu0 %v3193_v36 }
  0x64   :  { %2293 = vmatprep.subr.bf16.mxu1 %v3199_v42 }
  0x66   :  { %2267 = vmatpush1.bf16.msra.mxu0 %v3202_v48 }
  0x67   :  { %2295 = vmatpush1.bf16.msra.mxu1 %v3206_v50  ;;  %2301 = vmatprep.subr.bf16.mxu0 %v3116_v6 }
  0x68   :  { %2297 = vmatprep.subr.bf16.mxu1 %v3209_v51 }
  0x6b   :  { %2299 = vmatpush1.bf16.msra.mxu1 %v3213_v58 }
  0x6c   :  { %2333 = vmatprep.subr.bf16.mxu1 %v3134_v29 }
 0x11c   :  { %v205_v7 = vpop.f32.mrb[0].mxu0 }
 0x11d   :  { %v293_v9 = vadd.f32 %v205_v7, %v131_v4  ;;  %v207_v14 = vpop.f32.mrb[1].mxu0 }
 0x11e   :  { %v294_v15 = vadd.f32 %v207_v14, %v132_v5 }
 0x11f   :  { %v2108_v17 = vmul.f32 -1.442695, %v293_v9 }
 0x120   :  { %v2110_v22 = vmul.f32 -1.442695, %v294_v15  ;;  %v211_v23 = vpop.f32.mrb[2].mxu0 }
 0x121   :  { %2734 = vpow2.f32 %v2108_v17  ;;  %v297_v28 = vadd.f32 %v211_v23, %v135_v16  ;;  %v213_v30 = vpop.f32.mrb[3].mxu0  ;;  %v282_v31 = vpop.f32.mrb[0].mxu1 }
 0x122   :  { %2736 = vpow2.f32 %v2110_v22  ;;  %v298_v34 = vadd.f32 %v213_v30, %v136_v20  ;;  %v284_v38 = vpop.f32.mrb[1].mxu1  ;;  %v295_v61 = vadd.f32 %v282_v31, %v133_v47 }
 0x123   :  { %v2109_v39 = vmul.f32 -1.442695, %v297_v28  ;;  %v296_v43 = vadd.f32 %v284_v38, %v134_v26  ;;  %v127_v28 = vld [vmem:[#allocation4] sm:$0xff] }
 0x124   :  { %v2111_v45 = vmul.f32 -1.442695, %v298_v34 }
 0x125   :  { %2738 = vpow2.f32 %v2109_v39  ;;  %v288_v54 = vpop.f32.mrb[2].mxu1  ;;  %v2112_v57 = vmul.f32 -1.442695, %v296_v43 }
 0x126   :  { %2740 = vpow2.f32 %v2111_v45  ;;  %v290_v56 = vpop.f32.mrb[3].mxu1  ;;  %v299_v9 = vadd.f32 %v288_v54, %v137_v63  ;;  %v128_v45 = vld [vmem:[#allocation4 + $0x8] sm:$0xff] }
 0x127   :  { %v300_v60 = vadd.f32 %v290_v56, %v138_v46  ;;  %2742 = vpow2.f32 %v2112_v57 }
 0x128   :  { %2744 = vtanh.f32 %v295_v61 }
 0x129   :  { %v2113_v2 = vmul.f32 -1.442695, %v300_v60 }
 0x12b   :  { %v2735_v4 = vpop.eup %2734  ;;  %2746 = vpow2.f32 %v2113_v2 }
 0x12c   :  { %v2737_v5 = vpop.eup %2736  ;;  %v307_v7 = vadd.f32 1.0, %v2735_v4 }
 0x12d   :  { %v319_v14 = vadd.f32 1.0, %v2737_v5 }
 0x12e   :  { %2748 = vrcp.f32 %v307_v7 }
 0x12f   :  { %v2739_v15 = vpop.eup %2738  ;;  %2750 = vrcp.f32 %v319_v14  ;;  %v2130_v14 = vsel %vm835_vm4, 1.0, %v3050_v10 }
 0x130   :  { %v2741_v16 = vpop.eup %2740  ;;  %v308_v17 = vadd.f32 1.0, %v2739_v15  ;;  %2752 = vtanh.f32 %v299_v9  ;;  %v2131_v15 = vsel %vm836_vm5, 1.0, %v3050_v10 }
 0x131   :  { %v320_v20 = vadd.f32 1.0, %v2741_v16  ;;  %v2743_v22 = vpop.eup %2742  ;;  %v2704_v16 = vpack.i.bf16 %v2131_v15, %v2130_v14  ;;  %v379_v14 = vld [vmem:[#allocation8 + $0x78] sm:$0xff]  ;;  %v374_v15 = vld [vmem:[#allocation8 + $0x50] sm:$0xff] }
 0x132   :  { %2754 = vrcp.f32 %v308_v17  ;;  %v2745_v23 = vpop.eup %2744  ;;  %v333_v31 = vadd.f32 1.0, %v2743_v22  ;;  %v372_v17 = vld [vmem:[#allocation8 + $0x40] sm:$0xff] }
 0x133   :  { %2756 = vrcp.f32 %v320_v20  ;;  %2705 = vperm.xlu1 %2703, %v2704_v16   ;;  %v373_v20 = vld [vmem:[#allocation8 + $0x48] sm:$0xff] }
 0x134   :  { %2758 = vrcp.f32 %v333_v31 }
 0x135   :  { %v2747_v26 = vpop.eup %2746 }
 0x136   :  { %v334_v54 = vadd.f32 1.0, %v2747_v26 }
 0x138   :  { %v2749_v30 = vpop.eup %2748 }
 0x139   :  { %v2751_v34 = vpop.eup %2750  ;;  %v341_v38 = vmul.f32 %v2749_v30, %v2745_v23 }
 0x13a   :  { %v2753_v39 = vpop.eup %2752  ;;  %v339_v43 = vmul.f32 %v2751_v34, %v127_v28  ;;  %v376_v34 = vld [vmem:[#allocation8 + $0x60] sm:$0xff] }
 0x13c   :  { %v2755_v46 = vpop.eup %2754  ;;  %v3259_v47 = vadd.f32 %v341_v38, %v339_v43 }
 0x13d   :  { %v2757_v56 = vpop.eup %2756  ;;  %v342_v57 = vmul.f32 %v2755_v46, %v2753_v39  ;;  %v377_v39 = vld [vmem:[#allocation8 + $0x68] sm:$0xff] }
 0x13e   :  { %v340_v60 = vmul.f32 %v2757_v56, %v128_v45  ;;  %2760 = vtanh.f32 %v3259_v47  ;;  %v2759_v63 = vpop.eup %2758 }
 0x13f   :  { %2762 = vrcp.f32 %v334_v54  ;;  %v375_v54 = vld [vmem:[#allocation8 + $0x58] sm:$0xff] }
 0x140   :  { %v3262_v61 = vadd.f32 %v342_v57, %v340_v60 }
 0x142   :  { %2764 = vtanh.f32 %v3262_v61 }
 0x148   :  { %v2761_v2 = vpop.eup %2760 }
 0x149   :  { %v3265_v4 = vmul.f32 %v2761_v2, %v2759_v63  ;;  %v2763_v5 = vpop.eup %2762 }
 0x14b   :  { %445 = vmatmul.mubr.f32.vlgmr.msra.gmra.mrb[4].mxu0 %v3265_v4  ;;  %522 = vmatmul.mubr.f32.vlgmr.msra.gmra.mrb[4].mxu1 %v3265_v4 }
 0x14c   :  { %v2765_v7 = vpop.eup %2764  ;;  %450 = vmatprep.mubr.f32.mxu0 %v3050_v10  ;;  %527 = vmatprep.mubr.f32.mxu1 %v3050_v10 }
 0x14d   :  { %v3271_v9 = vmul.f32 %v2765_v7, %v2763_v5  ;;  %2303 = vmatpush1.bf16.msra.mxu0 %v3122_v12  ;;  %2335 = vmatpush1.bf16.msra.mxu1 %v3136_v32 }
 0x14e   :  { %2305 = vmatprep.subr.bf16.mxu0 %v3124_v13  ;;  %2337 = vmatprep.subr.bf16.mxu1 %v3146_v40 }
 0x14f   :  { %451 = vmatmul.mubr.f32.gmra.mrb[6].mxu0 %v3271_v9  ;;  %528 = vmatmul.mubr.f32.gmra.mrb[6].mxu1 %v3271_v9 }
 0x150   :  { %686 = vmatprep.mubr.f32.mxu0 %v3050_v10  ;;  %763 = vmatprep.mubr.f32.mxu1 %v3050_v10 }
 0x151   :  { %2307 = vmatpush1.bf16.msra.mxu0 %v3129_v21  ;;  %2339 = vmatpush1.bf16.msra.mxu1 %v3148_v44 }
 0x152   :  { %2309 = vmatprep.subr.bf16.mxu0 %v3132_v24  ;;  %2341 = vmatprep.subr.bf16.mxu1 %v3154_v52 }
 0x155   :  { %2311 = vmatpush1.bf16.msra.mxu0 %v3139_v33  ;;  %2343 = vmatpush1.bf16.msra.mxu1 %v3160_v55 }
 0x156   :  { %2313 = vmatprep.subr.bf16.mxu0 %v3143_v37  ;;  %2345 = vmatprep.subr.bf16.mxu1 %v3163_v59 }
 0x159   :  { %2315 = vmatpush1.bf16.msra.mxu0 %v3152_v49  ;;  %2347 = vmatpush1.bf16.msra.mxu1 %v3172_v8 }
 0x15a   :  { %2317 = vmatprep.subr.bf16.mxu0 %v3157_v53  ;;  %2349 = vmatprep.subr.bf16.mxu1 %v3175_v11 }
 0x15d   :  { %2319 = vmatpush1.bf16.msra.mxu0 %v3166_v62  ;;  %2351 = vmatpush1.bf16.msra.mxu1 %v3184_v25 }
 0x15e   :  { %2321 = vmatprep.subr.bf16.mxu0 %v3169_v3  ;;  %2353 = vmatprep.subr.bf16.mxu1 %v3187_v27 }
 0x161   :  { %2323 = vmatpush1.bf16.msra.mxu0 %v3178_v18  ;;  %2355 = vmatpush1.bf16.msra.mxu1 %v3196_v41 }
 0x162   :  { %2325 = vmatprep.subr.bf16.mxu0 %v3181_v19  ;;  %2357 = vmatprep.subr.bf16.mxu1 %v3199_v42 }
 0x165   :  { %2327 = vmatpush1.bf16.msra.mxu0 %v3190_v35  ;;  %2359 = vmatpush1.bf16.msra.mxu1 %v3206_v50 }
 0x166   :  { %2329 = vmatprep.subr.bf16.mxu0 %v3193_v36  ;;  %2361 = vmatprep.subr.bf16.mxu1 %v3209_v51 }
 0x169   :  { %2331 = vmatpush1.bf16.msra.mxu0 %v3202_v48  ;;  %2363 = vmatpush1.bf16.msra.mxu1 %v3213_v58 }
 0x16a   :  { %2365 = vmatprep.subr.bf16.mxu0 %v3116_v6  ;;  %2397 = vmatprep.subr.bf16.mxu1 %v3134_v29 }
 0x21e   :  { %v446_v22 = vpop.f32.mrb[4].mxu0  ;;  %v523_v23 = vpop.f32.mrb[4].mxu1 }
 0x21f   :  { %v534_v26 = vadd.f32 %v446_v22, %v372_v17  ;;  %v448_v28 = vpop.f32.mrb[5].mxu0  ;;  %v525_v30 = vpop.f32.mrb[5].mxu1  ;;  %v378_v22 = vld [vmem:[#allocation8 + $0x70] sm:$0xff] }
 0x220   :  { %v535_v31 = vadd.f32 %v448_v28, %v373_v20  ;;  %v537_v5 = vadd.f32 %v525_v30, %v375_v54  ;;  %v536_v20 = vadd.f32 %v523_v23, %v374_v15 }
 0x221   :  { %v2116_v38 = vmul.f32 -1.442695, %v534_v26 }
 0x222   :  { %v2118_v43 = vmul.f32 -1.442695, %v535_v31  ;;  %v452_v45 = vpop.f32.mrb[6].mxu0  ;;  %v529_v46 = vpop.f32.mrb[6].mxu1  ;;  %v2120_v16 = vmul.f32 -1.442695, %v537_v5 }
 0x223   :  { %2766 = vpow2.f32 %v2116_v38  ;;  %v538_v56 = vadd.f32 %v452_v45, %v376_v34  ;;  %v454_v57 = vpop.f32.mrb[7].mxu0  ;;  %v531_v60 = vpop.f32.mrb[7].mxu1 }
 0x224   :  { %2768 = vpow2.f32 %v2118_v43  ;;  %v539_v63 = vadd.f32 %v454_v57, %v377_v39  ;;  %v541_v17 = vadd.f32 %v531_v60, %v379_v14  ;;  %v540_v43 = vadd.f32 %v529_v46, %v378_v22 }
 0x225   :  { %v2117_v2 = vmul.f32 -1.442695, %v538_v56 }
 0x226   :  { %v2119_v7 = vmul.f32 -1.442695, %v539_v63  ;;  %v2121_v34 = vmul.f32 -1.442695, %v541_v17 }
 0x227   :  { %2770 = vpow2.f32 %v2117_v2 }
 0x228   :  { %2772 = vpow2.f32 %v2119_v7 }
 0x229   :  { %2774 = vpow2.f32 %v2120_v16 }
 0x22a   :  { %2776 = vtanh.f32 %v536_v20 }
 0x22d   :  { %v2767_v26 = vpop.eup %2766 }
 0x22e   :  { %v2769_v28 = vpop.eup %2768  ;;  %v548_v31 = vadd.f32 1.0, %v2767_v26  ;;  %v2695_v26 = vpop.permute.xlu0 %2694 }
 0x22f   :  { %v560_v38 = vadd.f32 1.0, %v2769_v28 }
 0x230   :  { %2778 = vrcp.f32 %v548_v31  ;;  %v2696_v31 = vunpack.i.l.bf16 %v2695_v26 }
 0x231   :  { %v2771_v39 = vpop.eup %2770  ;;  %2780 = vrcp.f32 %v560_v38  ;;  %v2697_v38 = vunpack.i.h.bf16 %v2695_v26 }
 0x232   :  { %v2773_v30 = vpop.eup %2772  ;;  %v549_v45 = vadd.f32 1.0, %v2771_v39  ;;  %2782 = vpow2.f32 %v2121_v34 }
 0x233   :  { %2784 = vtanh.f32 %v540_v43  ;;  %v561_v54 = vadd.f32 1.0, %v2773_v30  ;;  %v2775_v23 = vpop.eup %2774  ;;  %v367_v43 = vmul.f32 %v2696_v31, %v3265_v4 }
 0x234   :  { %2786 = vrcp.f32 %v549_v45  ;;  %v2777_v56 = vpop.eup %2776  ;;  %v574_v2 = vadd.f32 1.0, %v2775_v23  ;;  %v129_v45 = vld [vmem:[#allocation5] sm:$0xff] }
 0x235   :  { %2788 = vrcp.f32 %v561_v54 }
 0x236   :  { %2790 = vrcp.f32 %v574_v2  ;;  %v130_v2 = vld [vmem:[#allocation5 + $0x8] sm:$0xff] }
 0x23a   :  { %v2779_v57 = vpop.eup %2778 }
 0x23b   :  { %v2781_v60 = vpop.eup %2780  ;;  %v582_v63 = vmul.f32 %v2779_v57, %v2777_v56  ;;  %v369_v56 = vadd.f32 %v367_v43, %v129_v45  ;;  %v619_v45 = vld [vmem:[#allocation8 + $0xa8] sm:$0xff] }
 0x23c   :  { %v2783_v5 = vpop.eup %2782  ;;  %v580_v7 = vmul.f32 %v2781_v60, %v3259_v47  ;;  %v2700_v47 = vpop.permute.xlu0 %2699 }
 0x23d   :  { %v2785_v46 = vpop.eup %2784  ;;  %v575_v20 = vadd.f32 1.0, %v2783_v5  ;;  %v2701_v39 = vunpack.i.l.bf16 %v2700_v47  ;;  %v2702_v57 = vunpack.i.h.bf16 %v2700_v47 }
 0x23e   :  { %v2787_v14 = vpop.eup %2786  ;;  %v3314_v15 = vadd.f32 %v582_v63, %v580_v7 }
 0x23f   :  { %v2789_v16 = vpop.eup %2788  ;;  %v583_v17 = vmul.f32 %v2787_v14, %v2785_v46  ;;  %v2138_v14 = vsel %vm1077_vm6, 1.0, %v3050_v10 }
 0x240   :  { %v581_v22 = vmul.f32 %v2789_v16, %v3262_v61  ;;  %2792 = vtanh.f32 %v3314_v15  ;;  %v2791_v34 = vpop.eup %2790  ;;  %v368_v61 = vmul.f32 %v2697_v38, %v3271_v9  ;;  %v2139_v16 = vsel %vm1078_vm7, 1.0, %v3050_v10 }
 0x241   :  { %2794 = vrcp.f32 %v575_v20  ;;  %v614_v20 = vld [vmem:[#allocation8 + $0x80] sm:$0xff] }
 0x242   :  { %v3318_v28 = vadd.f32 %v583_v17, %v581_v22  ;;  %v370_v9 = vadd.f32 %v368_v61, %v130_v2  ;;  %v2709_v17 = vpack.i.bf16 %v2139_v16, %v2138_v14  ;;  %v615_v22 = vld [vmem:[#allocation8 + $0x88] sm:$0xff]  ;;  %v621_v14 = vld [vmem:[#allocation8 + $0xb8] sm:$0xff]  ;;  %v616_v16 = vld [vmem:[#allocation8 + $0x90] sm:$0xff] }
 0x244   :  { %2796 = vtanh.f32 %v3318_v28  ;;  %2710 = vperm.xlu1 %2703, %v2709_v17  }
 0x24a   :  { %v2793_v30 = vpop.eup %2792 }
 0x24b   :  { %v588_v54 = vmul.f32 %v2793_v30, %v2791_v34  ;;  %v2795_v23 = vpop.eup %2794 }
 0x24d   :  { %v609_v60 = vmul.f32 %v2701_v39, %v588_v54  ;;  %687 = vmatmul.mubr.f32.vlgmr.msra.gmra.mrb[8].mxu0 %v588_v54  ;;  %764 = vmatmul.mubr.f32.vlgmr.msra.gmra.mrb[8].mxu1 %v588_v54  ;;  %v618_v39 = vld [vmem:[#allocation8 + $0xa0] sm:$0xff] }
 0x24e   :  { %v2797_v63 = vpop.eup %2796  ;;  %692 = vmatprep.mubr.f32.mxu0 %v3050_v10  ;;  %769 = vmatprep.mubr.f32.mxu1 %v3050_v10 }
 0x24f   :  { %v589_v5 = vmul.f32 %v2797_v63, %v2795_v23  ;;  %v3325_v4 = vadd.f32 %v609_v60, %v369_v56  ;;  %2367 = vmatpush1.bf16.msra.mxu0 %v3122_v12  ;;  %2399 = vmatpush1.bf16.msra.mxu1 %v3136_v32  ;;  %v617_v56 = vld [vmem:[#allocation8 + $0x98] sm:$0xff] }
 0x250   :  { %2369 = vmatprep.subr.bf16.mxu0 %v3124_v13  ;;  %2401 = vmatprep.subr.bf16.mxu1 %v3146_v40 }
 0x251   :  { %v610_v7 = vmul.f32 %v2702_v57, %v589_v5  ;;  %693 = vmatmul.mubr.f32.gmra.mrb[10].mxu0 %v589_v5  ;;  %770 = vmatmul.mubr.f32.gmra.mrb[10].mxu1 %v589_v5 }
 0x252   :  { %928 = vmatprep.mubr.f32.mxu0 %v3050_v10  ;;  %1005 = vmatprep.mubr.f32.mxu1 %v3050_v10 }
 0x253   :  { %v3333_v46 = vadd.f32 %v610_v7, %v370_v9  ;;  %2371 = vmatpush1.bf16.msra.mxu0 %v3129_v21  ;;  %2403 = vmatpush1.bf16.msra.mxu1 %v3148_v44 }
 0x254   :  { %2373 = vmatprep.subr.bf16.mxu0 %v3132_v24  ;;  %2405 = vmatprep.subr.bf16.mxu1 %v3154_v52 }
 0x257   :  { %2375 = vmatpush1.bf16.msra.mxu0 %v3139_v33  ;;  %2407 = vmatpush1.bf16.msra.mxu1 %v3160_v55 }
 0x258   :  { %2377 = vmatprep.subr.bf16.mxu0 %v3143_v37  ;;  %2409 = vmatprep.subr.bf16.mxu1 %v3163_v59 }
 0x25b   :  { %2379 = vmatpush1.bf16.msra.mxu0 %v3152_v49  ;;  %2411 = vmatpush1.bf16.msra.mxu1 %v3172_v8 }
 0x25c   :  { %2381 = vmatprep.subr.bf16.mxu0 %v3157_v53  ;;  %2413 = vmatprep.subr.bf16.mxu1 %v3175_v11 }
 0x25f   :  { %2383 = vmatpush1.bf16.msra.mxu0 %v3166_v62  ;;  %2415 = vmatpush1.bf16.msra.mxu1 %v3184_v25 }
 0x260   :  { %2385 = vmatprep.subr.bf16.mxu0 %v3169_v3  ;;  %2417 = vmatprep.subr.bf16.mxu1 %v3187_v27 }
 0x263   :  { %2387 = vmatpush1.bf16.msra.mxu0 %v3178_v18  ;;  %2419 = vmatpush1.bf16.msra.mxu1 %v3196_v41 }
 0x264   :  { %2389 = vmatprep.subr.bf16.mxu0 %v3181_v19  ;;  %2421 = vmatprep.subr.bf16.mxu1 %v3199_v42 }
 0x267   :  { %2391 = vmatpush1.bf16.msra.mxu0 %v3190_v35  ;;  %2423 = vmatpush1.bf16.msra.mxu1 %v3206_v50 }
 0x268   :  { %2393 = vmatprep.subr.bf16.mxu0 %v3193_v36  ;;  %2425 = vmatprep.subr.bf16.mxu1 %v3209_v51 }
 0x26b   :  { %2395 = vmatpush1.bf16.msra.mxu0 %v3202_v48  ;;  %2427 = vmatpush1.bf16.msra.mxu1 %v3213_v58 }
 0x26c   :  { %2429 = vmatprep.subr.bf16.mxu0 %v3116_v6  ;;  %2461 = vmatprep.subr.bf16.mxu1 %v3134_v29 }
 0x320   :  { %v688_v26 = vpop.f32.mrb[8].mxu0  ;;  %v765_v31 = vpop.f32.mrb[8].mxu1 }
 0x321   :  { %v776_v47 = vadd.f32 %v688_v26, %v614_v20  ;;  %v690_v34 = vpop.f32.mrb[9].mxu0  ;;  %v767_v38 = vpop.f32.mrb[9].mxu1  ;;  %v620_v26 = vld [vmem:[#allocation8 + $0xb0] sm:$0xff] }
 0x322   :  { %v777_v43 = vadd.f32 %v690_v34, %v615_v22  ;;  %v779_v9 = vadd.f32 %v767_v38, %v617_v56  ;;  %v778_v22 = vadd.f32 %v765_v31, %v616_v16 }
 0x323   :  { %v2124_v30 = vmul.f32 -1.442695, %v776_v47 }
 0x324   :  { %v2126_v54 = vmul.f32 -1.442695, %v777_v43  ;;  %v694_v23 = vpop.f32.mrb[10].mxu0  ;;  %v771_v61 = vpop.f32.mrb[10].mxu1  ;;  %v2128_v17 = vmul.f32 -1.442695, %v779_v9 }
 0x325   :  { %2798 = vpow2.f32 %v2124_v30  ;;  %v780_v57 = vadd.f32 %v694_v23, %v618_v39  ;;  %v696_v60 = vpop.f32.mrb[11].mxu0  ;;  %v773_v63 = vpop.f32.mrb[11].mxu1 }
 0x326   :  { %2800 = vpow2.f32 %v2126_v54  ;;  %v781_v2 = vadd.f32 %v696_v60, %v619_v45  ;;  %v783_v20 = vadd.f32 %v773_v63, %v621_v14  ;;  %v782_v54 = vadd.f32 %v771_v61, %v620_v26 }
 0x327   :  { %v2125_v5 = vmul.f32 -1.442695, %v780_v57 }
 0x328   :  { %v2127_v7 = vmul.f32 -1.442695, %v781_v2  ;;  %v2129_v39 = vmul.f32 -1.442695, %v783_v20 }
 0x329   :  { %2802 = vpow2.f32 %v2125_v5 }
 0x32a   :  { %2804 = vpow2.f32 %v2127_v7 }
 0x32b   :  { %2806 = vpow2.f32 %v2128_v17 }
 0x32c   :  { %2808 = vtanh.f32 %v778_v22 }
 0x32f   :  { %v2799_v47 = vpop.eup %2798 }
 0x330   :  { %v2801_v34 = vpop.eup %2800  ;;  %v790_v43 = vadd.f32 1.0, %v2799_v47 }
 0x331   :  { %v802_v30 = vadd.f32 1.0, %v2801_v34  ;;  %v2706_v34 = vpop.permute.xlu1 %2705 }
 0x332   :  { %2810 = vrcp.f32 %v790_v43 }
 0x333   :  { %v2803_v45 = vpop.eup %2802  ;;  %2812 = vrcp.f32 %v802_v30 }
 0x334   :  { %v2805_v38 = vpop.eup %2804  ;;  %v791_v23 = vadd.f32 1.0, %v2803_v45  ;;  %2814 = vpow2.f32 %v2129_v39  ;;  %v2708_v45 = vunpack.i.h.bf16 %v2706_v34 }
 0x335   :  { %2816 = vtanh.f32 %v782_v54  ;;  %v803_v56 = vadd.f32 1.0, %v2805_v38  ;;  %v2807_v31 = vpop.eup %2806 }
 0x336   :  { %2818 = vrcp.f32 %v791_v23  ;;  %v2809_v57 = vpop.eup %2808  ;;  %v816_v5 = vadd.f32 1.0, %v2807_v31 }
 0x337   :  { %2820 = vrcp.f32 %v803_v56 }
 0x338   :  { %2822 = vrcp.f32 %v816_v5 }
 0x33c   :  { %v2811_v60 = vpop.eup %2810 }
 0x33d   :  { %v2813_v63 = vpop.eup %2812  ;;  %v824_v2 = vmul.f32 %v2811_v60, %v2809_v57 }
 0x33e   :  { %v2815_v9 = vpop.eup %2814  ;;  %v822_v7 = vmul.f32 %v2813_v63, %v3314_v15  ;;  %v2707_v15 = vunpack.i.l.bf16 %v2706_v34  ;;  %v856_v63 = vld [vmem:[#allocation8 + $0xc0] sm:$0xff] }
 0x33f   :  { %v2817_v61 = vpop.eup %2816  ;;  %v817_v22 = vadd.f32 1.0, %v2815_v9 }
 0x340   :  { %v2819_v14 = vpop.eup %2818  ;;  %v3368_v16 = vadd.f32 %v824_v2, %v822_v7  ;;  %v857_v2 = vld [vmem:[#allocation8 + $0xc8] sm:$0xff] }
 0x341   :  { %v2821_v17 = vpop.eup %2820  ;;  %v825_v20 = vmul.f32 %v2819_v14, %v2817_v61 }
 0x342   :  { %v823_v26 = vmul.f32 %v2821_v17, %v3318_v28  ;;  %2824 = vtanh.f32 %v3368_v16  ;;  %v2823_v43 = vpop.eup %2822 }
 0x343   :  { %2826 = vrcp.f32 %v817_v22 }
 0x344   :  { %v3372_v47 = vadd.f32 %v825_v20, %v823_v26  ;;  %v860_v20 = vld [vmem:[#allocation8 + $0xe0] sm:$0xff]  ;;  %v861_v26 = vld [vmem:[#allocation8 + $0xe8] sm:$0xff] }
 0x346   :  { %2828 = vtanh.f32 %v3372_v47 }
 0x34c   :  { %v2825_v39 = vpop.eup %2824 }
 0x34d   :  { %v830_v30 = vmul.f32 %v2825_v39, %v2823_v43  ;;  %v2827_v54 = vpop.eup %2826  ;;  %v859_v39 = vld [vmem:[#allocation8 + $0xd8] sm:$0xff] }
 0x34f   :  { %v851_v38 = vmul.f32 %v2707_v15, %v830_v30  ;;  %929 = vmatmul.mubr.f32.vlgmr.msra.gmra.mrb[12].mxu0 %v830_v30  ;;  %1006 = vmatmul.mubr.f32.vlgmr.msra.gmra.mrb[12].mxu1 %v830_v30 }
 0x350   :  { %v2829_v23 = vpop.eup %2828  ;;  %934 = vmatprep.mubr.f32.mxu0 %v3050_v10  ;;  %1011 = vmatprep.mubr.f32.mxu1 %v3050_v10 }
 0x351   :  { %v831_v28 = vmul.f32 %v2829_v23, %v2827_v54  ;;  %v3378_v56 = vadd.f32 %v851_v38, %v3325_v4  ;;  %2431 = vmatpush1.bf16.msra.mxu0 %v3122_v12  ;;  %2463 = vmatpush1.bf16.msra.mxu1 %v3136_v32  ;;  %v2146_v4 = vsel %vm1319_vm8, 1.0, %v3050_v10 }
 0x352   :  { %2433 = vmatprep.subr.bf16.mxu0 %v3124_v13  ;;  %2465 = vmatprep.subr.bf16.mxu1 %v3146_v40 }
 0x353   :  { %v852_v31 = vmul.f32 %v2708_v45, %v831_v28  ;;  %935 = vmatmul.mubr.f32.gmra.mrb[14].mxu0 %v831_v28  ;;  %1012 = vmatmul.mubr.f32.gmra.mrb[14].mxu1 %v831_v28 }
 0x354   :  { %1170 = vmatprep.mubr.f32.mxu0 %v3050_v10  ;;  %1247 = vmatprep.mubr.f32.mxu1 %v3050_v10 }
 0x355   :  { %v3387_v57 = vadd.f32 %v852_v31, %v3333_v46  ;;  %2435 = vmatpush1.bf16.msra.mxu0 %v3129_v21  ;;  %2467 = vmatpush1.bf16.msra.mxu1 %v3148_v44  ;;  %v2147_v46 = vsel %vm1320_vm9, 1.0, %v3050_v10 }
 0x356   :  { %2437 = vmatprep.subr.bf16.mxu0 %v3132_v24  ;;  %2469 = vmatprep.subr.bf16.mxu1 %v3154_v52  ;;  %v2714_v60 = vpack.i.bf16 %v2147_v46, %v2146_v4  ;;  %v863_v4 = vld [vmem:[#allocation8 + $0xf8] sm:$0xff]  ;;  %v858_v46 = vld [vmem:[#allocation8 + $0xd0] sm:$0xff] }
 0x358   :  { %2715 = vperm.xlu0 %2692, %v2714_v60  }
 0x359   :  { %2439 = vmatpush1.bf16.msra.mxu0 %v3139_v33  ;;  %2471 = vmatpush1.bf16.msra.mxu1 %v3160_v55 }
 0x35a   :  { %2441 = vmatprep.subr.bf16.mxu0 %v3143_v37  ;;  %2473 = vmatprep.subr.bf16.mxu1 %v3163_v59 }
 0x35d   :  { %2443 = vmatpush1.bf16.msra.mxu0 %v3152_v49  ;;  %2475 = vmatpush1.bf16.msra.mxu1 %v3172_v8 }
 0x35e   :  { %2445 = vmatprep.subr.bf16.mxu0 %v3157_v53  ;;  %2477 = vmatprep.subr.bf16.mxu1 %v3175_v11 }
 0x361   :  { %2447 = vmatpush1.bf16.msra.mxu0 %v3166_v62  ;;  %2479 = vmatpush1.bf16.msra.mxu1 %v3184_v25 }
 0x362   :  { %2449 = vmatprep.subr.bf16.mxu0 %v3169_v3  ;;  %2481 = vmatprep.subr.bf16.mxu1 %v3187_v27 }
 0x365   :  { %2451 = vmatpush1.bf16.msra.mxu0 %v3178_v18  ;;  %2483 = vmatpush1.bf16.msra.mxu1 %v3196_v41 }
 0x366   :  { %2453 = vmatprep.subr.bf16.mxu0 %v3181_v19  ;;  %2485 = vmatprep.subr.bf16.mxu1 %v3199_v42 }
 0x369   :  { %2455 = vmatpush1.bf16.msra.mxu0 %v3190_v35  ;;  %2487 = vmatpush1.bf16.msra.mxu1 %v3206_v50 }
 0x36a   :  { %2457 = vmatprep.subr.bf16.mxu0 %v3193_v36  ;;  %2489 = vmatprep.subr.bf16.mxu1 %v3209_v51 }
 0x36d   :  { %2459 = vmatpush1.bf16.msra.mxu0 %v3202_v48  ;;  %2491 = vmatpush1.bf16.msra.mxu1 %v3213_v58 }
 0x36e   :  { %2493 = vmatprep.subr.bf16.mxu0 %v3116_v6  ;;  %2525 = vmatprep.subr.bf16.mxu1 %v3134_v29 }
 0x422   :  { %v930_v5 = vpop.f32.mrb[12].mxu0  ;;  %v1007_v9 = vpop.f32.mrb[12].mxu1 }
 0x423   :  { %v1018_v7 = vadd.f32 %v930_v5, %v856_v63  ;;  %v932_v61 = vpop.f32.mrb[13].mxu0  ;;  %v1009_v14 = vpop.f32.mrb[13].mxu1  ;;  %v862_v5 = vld [vmem:[#allocation8 + $0xf0] sm:$0xff] }
 0x424   :  { %v1019_v17 = vadd.f32 %v932_v61, %v857_v2  ;;  %v1021_v28 = vadd.f32 %v1009_v14, %v859_v39  ;;  %v1020_v2 = vadd.f32 %v1007_v9, %v858_v46 }
 0x425   :  { %v2132_v22 = vmul.f32 -1.442695, %v1018_v7 }
 0x426   :  { %v2134_v34 = vmul.f32 -1.442695, %v1019_v17  ;;  %v936_v43 = vpop.f32.mrb[14].mxu0  ;;  %v1013_v15 = vpop.f32.mrb[14].mxu1  ;;  %v2136_v60 = vmul.f32 -1.442695, %v1021_v28 }
 0x427   :  { %2830 = vpow2.f32 %v2132_v22  ;;  %v1022_v30 = vadd.f32 %v936_v43, %v860_v20  ;;  %v938_v54 = vpop.f32.mrb[15].mxu0  ;;  %v1015_v45 = vpop.f32.mrb[15].mxu1 }
 0x428   :  { %2832 = vpow2.f32 %v2134_v34  ;;  %v1023_v38 = vadd.f32 %v938_v54, %v861_v26  ;;  %v1025_v63 = vadd.f32 %v1015_v45, %v863_v4  ;;  %v1024_v34 = vadd.f32 %v1013_v15, %v862_v5 }
 0x429   :  { %v2133_v23 = vmul.f32 -1.442695, %v1022_v30 }
 0x42a   :  { %v2135_v31 = vmul.f32 -1.442695, %v1023_v38  ;;  %v2137_v20 = vmul.f32 -1.442695, %v1025_v63 }
 0x42b   :  { %2834 = vpow2.f32 %v2133_v23 }
 0x42c   :  { %2836 = vpow2.f32 %v2135_v31 }
 0x42d   :  { %2838 = vpow2.f32 %v2136_v60 }
 0x42e   :  { %2840 = vtanh.f32 %v1020_v2 }
 0x431   :  { %v2831_v7 = vpop.eup %2830 }
 0x432   :  { %v2833_v61 = vpop.eup %2832  ;;  %v1032_v17 = vadd.f32 1.0, %v2831_v7 }
 0x433   :  { %v1044_v22 = vadd.f32 1.0, %v2833_v61  ;;  %v2711_v61 = vpop.permute.xlu1 %2710 }
 0x434   :  { %2842 = vrcp.f32 %v1032_v17 }
 0x435   :  { %v2835_v26 = vpop.eup %2834  ;;  %2844 = vrcp.f32 %v1044_v22 }
 0x436   :  { %v2837_v14 = vpop.eup %2836  ;;  %v1033_v43 = vadd.f32 1.0, %v2835_v26  ;;  %2846 = vpow2.f32 %v2137_v20  ;;  %v2713_v26 = vunpack.i.h.bf16 %v2711_v61 }
 0x437   :  { %2848 = vtanh.f32 %v1024_v34  ;;  %v1045_v39 = vadd.f32 1.0, %v2837_v14  ;;  %v2839_v9 = vpop.eup %2838 }
 0x438   :  { %2850 = vrcp.f32 %v1033_v43  ;;  %v2841_v30 = vpop.eup %2840  ;;  %v1058_v23 = vadd.f32 1.0, %v2839_v9 }
 0x439   :  { %2852 = vrcp.f32 %v1045_v39 }
 0x43a   :  { %2854 = vrcp.f32 %v1058_v23 }
 0x43e   :  { %v2843_v54 = vpop.eup %2842 }
 0x43f   :  { %v2845_v45 = vpop.eup %2844  ;;  %v1066_v38 = vmul.f32 %v2843_v54, %v2841_v30 }
 0x440   :  { %v2847_v28 = vpop.eup %2846  ;;  %v1064_v31 = vmul.f32 %v2845_v45, %v3368_v16  ;;  %v2712_v16 = vunpack.i.l.bf16 %v2711_v61  ;;  %v1098_v45 = vld [vmem:[#allocation8 + $0x100] sm:$0xff] }
 0x441   :  { %v2849_v15 = vpop.eup %2848  ;;  %v1059_v2 = vadd.f32 1.0, %v2847_v28 }
 0x442   :  { %v2851_v4 = vpop.eup %2850  ;;  %v3422_v46 = vadd.f32 %v1066_v38, %v1064_v31  ;;  %v1099_v38 = vld [vmem:[#allocation8 + $0x108] sm:$0xff] }
 0x443   :  { %v2853_v60 = vpop.eup %2852  ;;  %v1067_v63 = vmul.f32 %v2851_v4, %v2849_v15 }
 0x444   :  { %v1065_v5 = vmul.f32 %v2853_v60, %v3372_v47  ;;  %2856 = vtanh.f32 %v3422_v46  ;;  %v2855_v17 = vpop.eup %2854 }
 0x445   :  { %2858 = vrcp.f32 %v1059_v2 }
 0x446   :  { %v3426_v7 = vadd.f32 %v1067_v63, %v1065_v5  ;;  %v1102_v63 = vld [vmem:[#allocation8 + $0x120] sm:$0xff]  ;;  %v1103_v5 = vld [vmem:[#allocation8 + $0x128] sm:$0xff] }
 0x448   :  { %2860 = vtanh.f32 %v3426_v7 }
 0x44e   :  { %v2857_v20 = vpop.eup %2856 }
 0x44f   :  { %v1072_v22 = vmul.f32 %v2857_v20, %v2855_v17  ;;  %v2859_v34 = vpop.eup %2858  ;;  %v1101_v20 = vld [vmem:[#allocation8 + $0x118] sm:$0xff] }
 0x451   :  { %v1093_v14 = vmul.f32 %v2712_v16, %v1072_v22  ;;  %1171 = vmatmul.mubr.f32.vlgmr.msra.gmra.mrb[16].mxu0 %v1072_v22  ;;  %1248 = vmatmul.mubr.f32.vlgmr.msra.gmra.mrb[16].mxu1 %v1072_v22 }
 0x452   :  { %v2861_v43 = vpop.eup %2860  ;;  %1176 = vmatprep.mubr.f32.mxu0 %v3050_v10  ;;  %1253 = vmatprep.mubr.f32.mxu1 %v3050_v10 }
 0x453   :  { %v1073_v47 = vmul.f32 %v2861_v43, %v2859_v34  ;;  %v3432_v39 = vadd.f32 %v1093_v14, %v3378_v56  ;;  %2495 = vmatpush1.bf16.msra.mxu0 %v3122_v12  ;;  %2527 = vmatpush1.bf16.msra.mxu1 %v3136_v32  ;;  %v2154_v56 = vsel %vm1561_vm10, 1.0, %v3050_v10 }
 0x454   :  { %2497 = vmatprep.subr.bf16.mxu0 %v3124_v13  ;;  %2529 = vmatprep.subr.bf16.mxu1 %v3146_v40 }
 0x455   :  { %v1094_v9 = vmul.f32 %v2713_v26, %v1073_v47  ;;  %1177 = vmatmul.mubr.f32.gmra.mrb[18].mxu0 %v1073_v47  ;;  %1254 = vmatmul.mubr.f32.gmra.mrb[18].mxu1 %v1073_v47 }
 0x456   :  { %1412 = vmatprep.mubr.f32.mxu0 %v3050_v10  ;;  %1489 = vmatprep.mubr.f32.mxu1 %v3050_v10 }
 0x457   :  { %v3441_v30 = vadd.f32 %v1094_v9, %v3387_v57  ;;  %2499 = vmatpush1.bf16.msra.mxu0 %v3129_v21  ;;  %2531 = vmatpush1.bf16.msra.mxu1 %v3148_v44  ;;  %v2155_v57 = vsel %vm1562_vm11, 1.0, %v3050_v10 }
 0x458   :  { %2501 = vmatprep.subr.bf16.mxu0 %v3132_v24  ;;  %2533 = vmatprep.subr.bf16.mxu1 %v3154_v52  ;;  %v2719_v54 = vpack.i.bf16 %v2155_v57, %v2154_v56  ;;  %v1105_v56 = vld [vmem:[#allocation8 + $0x138] sm:$0xff]  ;;  %v1100_v57 = vld [vmem:[#allocation8 + $0x110] sm:$0xff] }
 0x45a   :  { %2720 = vperm.xlu1 %2703, %v2719_v54  }
 0x45b   :  { %2503 = vmatpush1.bf16.msra.mxu0 %v3139_v33  ;;  %2535 = vmatpush1.bf16.msra.mxu1 %v3160_v55 }
 0x45c   :  { %2505 = vmatprep.subr.bf16.mxu0 %v3143_v37  ;;  %2537 = vmatprep.subr.bf16.mxu1 %v3163_v59 }
 0x45f   :  { %2507 = vmatpush1.bf16.msra.mxu0 %v3152_v49  ;;  %2539 = vmatpush1.bf16.msra.mxu1 %v3172_v8 }
 0x460   :  { %2509 = vmatprep.subr.bf16.mxu0 %v3157_v53  ;;  %2541 = vmatprep.subr.bf16.mxu1 %v3175_v11 }
 0x463   :  { %2511 = vmatpush1.bf16.msra.mxu0 %v3166_v62  ;;  %2543 = vmatpush1.bf16.msra.mxu1 %v3184_v25 }
 0x464   :  { %2513 = vmatprep.subr.bf16.mxu0 %v3169_v3  ;;  %2545 = vmatprep.subr.bf16.mxu1 %v3187_v27 }
 0x467   :  { %2515 = vmatpush1.bf16.msra.mxu0 %v3178_v18  ;;  %2547 = vmatpush1.bf16.msra.mxu1 %v3196_v41 }
 0x468   :  { %2517 = vmatprep.subr.bf16.mxu0 %v3181_v19  ;;  %2549 = vmatprep.subr.bf16.mxu1 %v3199_v42 }
 0x46b   :  { %2519 = vmatpush1.bf16.msra.mxu0 %v3190_v35  ;;  %2551 = vmatpush1.bf16.msra.mxu1 %v3206_v50 }
 0x46c   :  { %2521 = vmatprep.subr.bf16.mxu0 %v3193_v36  ;;  %2553 = vmatprep.subr.bf16.mxu1 %v3209_v51 }
 0x46f   :  { %2523 = vmatpush1.bf16.msra.mxu0 %v3202_v48  ;;  %2555 = vmatpush1.bf16.msra.mxu1 %v3213_v58 }
 0x470   :  { %2557 = vmatprep.subr.bf16.mxu0 %v3116_v6  ;;  %2589 = vmatprep.subr.bf16.mxu1 %v3134_v29 }
 0x524   :  { %v1172_v23 = vpop.f32.mrb[16].mxu0  ;;  %v1249_v28 = vpop.f32.mrb[16].mxu1 }
 0x525   :  { %v1260_v31 = vadd.f32 %v1172_v23, %v1098_v45  ;;  %v1174_v15 = vpop.f32.mrb[17].mxu0  ;;  %v1251_v4 = vpop.f32.mrb[17].mxu1  ;;  %v1104_v23 = vld [vmem:[#allocation8 + $0x130] sm:$0xff] }
 0x526   :  { %v1261_v60 = vadd.f32 %v1174_v15, %v1099_v38  ;;  %v1263_v47 = vadd.f32 %v1251_v4, %v1101_v20  ;;  %v1262_v38 = vadd.f32 %v1249_v28, %v1100_v57 }
 0x527   :  { %v2140_v2 = vmul.f32 -1.442695, %v1260_v31 }
 0x528   :  { %v2142_v61 = vmul.f32 -1.442695, %v1261_v60  ;;  %v1178_v17 = vpop.f32.mrb[18].mxu0  ;;  %v1255_v16 = vpop.f32.mrb[18].mxu1  ;;  %v2144_v54 = vmul.f32 -1.442695, %v1263_v47 }
 0x529   :  { %2862 = vpow2.f32 %v2140_v2  ;;  %v1264_v22 = vadd.f32 %v1178_v17, %v1102_v63  ;;  %v1180_v34 = vpop.f32.mrb[19].mxu0  ;;  %v1257_v26 = vpop.f32.mrb[19].mxu1 }
 0x52a   :  { %2864 = vpow2.f32 %v2142_v61  ;;  %v1265_v14 = vadd.f32 %v1180_v34, %v1103_v5  ;;  %v1267_v45 = vadd.f32 %v1257_v26, %v1105_v56  ;;  %v1266_v61 = vadd.f32 %v1255_v16, %v1104_v23 }
 0x52b   :  { %v2141_v43 = vmul.f32 -1.442695, %v1264_v22 }
 0x52c   :  { %v2143_v9 = vmul.f32 -1.442695, %v1265_v14  ;;  %v2145_v63 = vmul.f32 -1.442695, %v1267_v45 }
 0x52d   :  { %2866 = vpow2.f32 %v2141_v43 }
 0x52e   :  { %2868 = vpow2.f32 %v2143_v9 }
 0x52f   :  { %2870 = vpow2.f32 %v2144_v54 }
 0x530   :  { %2872 = vtanh.f32 %v1262_v38 }
 0x533   :  { %v2863_v31 = vpop.eup %2862 }
 0x534   :  { %v2865_v15 = vpop.eup %2864  ;;  %v1274_v60 = vadd.f32 1.0, %v2863_v31 }
 0x535   :  { %v1286_v2 = vadd.f32 1.0, %v2865_v15  ;;  %v2716_v15 = vpop.permute.xlu0 %2715 }
 0x536   :  { %2874 = vrcp.f32 %v1274_v60 }
 0x537   :  { %v2867_v5 = vpop.eup %2866  ;;  %2876 = vrcp.f32 %v1286_v2 }
 0x538   :  { %v2869_v4 = vpop.eup %2868  ;;  %v1275_v17 = vadd.f32 1.0, %v2867_v5  ;;  %2878 = vpow2.f32 %v2145_v63  ;;  %v2718_v5 = vunpack.i.h.bf16 %v2716_v15 }
 0x539   :  { %2880 = vtanh.f32 %v1266_v61  ;;  %v1287_v20 = vadd.f32 1.0, %v2869_v4  ;;  %v2871_v28 = vpop.eup %2870 }
 0x53a   :  { %2882 = vrcp.f32 %v1275_v17  ;;  %v2873_v22 = vpop.eup %2872  ;;  %v1300_v43 = vadd.f32 1.0, %v2871_v28 }
 0x53b   :  { %2884 = vrcp.f32 %v1287_v20 }
 0x53c   :  { %2886 = vrcp.f32 %v1300_v43 }
 0x540   :  { %v2875_v34 = vpop.eup %2874 }
 0x541   :  { %v2877_v26 = vpop.eup %2876  ;;  %v1308_v14 = vmul.f32 %v2875_v34, %v2873_v22 }
 0x542   :  { %v2879_v47 = vpop.eup %2878  ;;  %v1306_v9 = vmul.f32 %v2877_v26, %v3422_v46  ;;  %v2717_v46 = vunpack.i.l.bf16 %v2716_v15  ;;  %v1340_v26 = vld [vmem:[#allocation8 + $0x140] sm:$0xff] }
 0x543   :  { %v2881_v16 = vpop.eup %2880  ;;  %v1301_v38 = vadd.f32 1.0, %v2879_v47 }
 0x544   :  { %v2883_v56 = vpop.eup %2882  ;;  %v3476_v57 = vadd.f32 %v1308_v14, %v1306_v9  ;;  %v1341_v14 = vld [vmem:[#allocation8 + $0x148] sm:$0xff] }
 0x545   :  { %v2885_v54 = vpop.eup %2884  ;;  %v1309_v45 = vmul.f32 %v2883_v56, %v2881_v16 }
 0x546   :  { %v1307_v23 = vmul.f32 %v2885_v54, %v3426_v7  ;;  %2888 = vtanh.f32 %v3476_v57  ;;  %v2887_v60 = vpop.eup %2886  ;;  %v1344_v54 = vld [vmem:[#allocation8 + $0x160] sm:$0xff] }
 0x547   :  { %2890 = vrcp.f32 %v1301_v38 }
 0x548   :  { %v3480_v31 = vadd.f32 %v1309_v45, %v1307_v23  ;;  %v1345_v45 = vld [vmem:[#allocation8 + $0x168] sm:$0xff] }
 0x54a   :  { %2892 = vtanh.f32 %v3480_v31 }
 0x550   :  { %v2889_v63 = vpop.eup %2888 }
 0x551   :  { %v1314_v2 = vmul.f32 %v2889_v63, %v2887_v60  ;;  %v2891_v61 = vpop.eup %2890  ;;  %v1343_v60 = vld [vmem:[#allocation8 + $0x158] sm:$0xff] }
 0x553   :  { %v1335_v4 = vmul.f32 %v2717_v46, %v1314_v2  ;;  %1413 = vmatmul.mubr.f32.vlgmr.msra.gmra.mrb[20].mxu0 %v1314_v2  ;;  %1490 = vmatmul.mubr.f32.vlgmr.msra.gmra.mrb[20].mxu1 %v1314_v2 }
 0x554   :  { %v2893_v17 = vpop.eup %2892  ;;  %1418 = vmatprep.mubr.f32.mxu0 %v3050_v10  ;;  %1495 = vmatprep.mubr.f32.mxu1 %v3050_v10 }
 0x555   :  { %v1315_v7 = vmul.f32 %v2893_v17, %v2891_v61  ;;  %v3486_v20 = vadd.f32 %v1335_v4, %v3432_v39  ;;  %2559 = vmatpush1.bf16.msra.mxu0 %v3122_v12  ;;  %2591 = vmatpush1.bf16.msra.mxu1 %v3136_v32  ;;  %v2162_v39 = vsel %vm1803_vm12, 1.0, %v3050_v10 }
 0x556   :  { %2561 = vmatprep.subr.bf16.mxu0 %v3124_v13  ;;  %2593 = vmatprep.subr.bf16.mxu1 %v3146_v40 }
 0x557   :  { %v1336_v28 = vmul.f32 %v2718_v5, %v1315_v7  ;;  %1419 = vmatmul.mubr.f32.gmra.mrb[22].mxu0 %v1315_v7  ;;  %1496 = vmatmul.mubr.f32.gmra.mrb[22].mxu1 %v1315_v7  ;;  %v1347_v7 = vld [vmem:[#allocation8 + $0x178] sm:$0xff] }
 0x558   :  { %1654 = vmatprep.mubr.f32.mxu0 %v3050_v10  ;;  %1731 = vmatprep.mubr.f32.mxu1 %v3050_v10 }
 0x559   :  { %v3495_v22 = vadd.f32 %v1336_v28, %v3441_v30  ;;  %2563 = vmatpush1.bf16.msra.mxu0 %v3129_v21  ;;  %2595 = vmatpush1.bf16.msra.mxu1 %v3148_v44  ;;  %v2163_v30 = vsel %vm1804_vm13, 1.0, %v3050_v10  ;;  %v1342_v28 = vld [vmem:[#allocation8 + $0x150] sm:$0xff] }
 0x55a   :  { %2565 = vmatprep.subr.bf16.mxu0 %v3132_v24  ;;  %2597 = vmatprep.subr.bf16.mxu1 %v3154_v52  ;;  %v2724_v34 = vpack.i.bf16 %v2163_v30, %v2162_v39 }
 0x55c   :  { %2725 = vperm.xlu0 %2692, %v2724_v34  }
 0x55d   :  { %2567 = vmatpush1.bf16.msra.mxu0 %v3139_v33  ;;  %2599 = vmatpush1.bf16.msra.mxu1 %v3160_v55 }
 0x55e   :  { %2569 = vmatprep.subr.bf16.mxu0 %v3143_v37  ;;  %2601 = vmatprep.subr.bf16.mxu1 %v3163_v59 }
 0x561   :  { %2571 = vmatpush1.bf16.msra.mxu0 %v3152_v49  ;;  %2603 = vmatpush1.bf16.msra.mxu1 %v3172_v8 }
 0x562   :  { %2573 = vmatprep.subr.bf16.mxu0 %v3157_v53  ;;  %2605 = vmatprep.subr.bf16.mxu1 %v3175_v11 }
 0x565   :  { %2575 = vmatpush1.bf16.msra.mxu0 %v3166_v62  ;;  %2607 = vmatpush1.bf16.msra.mxu1 %v3184_v25 }
 0x566   :  { %2577 = vmatprep.subr.bf16.mxu0 %v3169_v3  ;;  %2609 = vmatprep.subr.bf16.mxu1 %v3187_v27 }
 0x569   :  { %2579 = vmatpush1.bf16.msra.mxu0 %v3178_v18  ;;  %2611 = vmatpush1.bf16.msra.mxu1 %v3196_v41 }
 0x56a   :  { %2581 = vmatprep.subr.bf16.mxu0 %v3181_v19  ;;  %2613 = vmatprep.subr.bf16.mxu1 %v3199_v42 }
 0x56d   :  { %2583 = vmatpush1.bf16.msra.mxu0 %v3190_v35  ;;  %2615 = vmatpush1.bf16.msra.mxu1 %v3206_v50 }
 0x56e   :  { %2585 = vmatprep.subr.bf16.mxu0 %v3193_v36  ;;  %2617 = vmatprep.subr.bf16.mxu1 %v3209_v51 }
 0x571   :  { %2587 = vmatpush1.bf16.msra.mxu0 %v3202_v48  ;;  %2619 = vmatpush1.bf16.msra.mxu1 %v3213_v58 }
 0x572   :  { %2621 = vmatprep.subr.bf16.mxu0 %v3116_v6  ;;  %2653 = vmatprep.subr.bf16.mxu1 %v3134_v29 }
 0x626   :  { %v1414_v43 = vpop.f32.mrb[20].mxu0  ;;  %v1491_v47 = vpop.f32.mrb[20].mxu1 }
 0x627   :  { %v1502_v9 = vadd.f32 %v1414_v43, %v1340_v26  ;;  %v1416_v16 = vpop.f32.mrb[21].mxu0  ;;  %v1493_v56 = vpop.f32.mrb[21].mxu1  ;;  %v1504_v34 = vadd.f32 %v1491_v47, %v1342_v28  ;;  %v1346_v26 = vld [vmem:[#allocation8 + $0x170] sm:$0xff] }
 0x628   :  { %v1503_v6 = vadd.f32 %v1416_v16, %v1341_v14  ;;  %v1505_v4 = vadd.f32 %v1493_v56, %v1343_v60 }
 0x629   :  { %v2148_v29 = vmul.f32 -1.442695, %v1502_v9 }
 0x62a   :  { %v2150_v38 = vmul.f32 -1.442695, %v1503_v6  ;;  %v1420_v23 = vpop.f32.mrb[22].mxu0  ;;  %v1497_v15 = vpop.f32.mrb[22].mxu1  ;;  %v2152_v39 = vmul.f32 -1.442695, %v1505_v4 }
 0x62b   :  { %2894 = vpow2.f32 %v2148_v29  ;;  %v1506_v46 = vadd.f32 %v1420_v23, %v1344_v54  ;;  %v1422_v63 = vpop.f32.mrb[23].mxu0  ;;  %v1499_v2 = vpop.f32.mrb[23].mxu1  ;;  %v1508_v54 = vadd.f32 %v1497_v15, %v1346_v26 }
 0x62c   :  { %2896 = vpow2.f32 %v2150_v38  ;;  %v1507_v61 = vadd.f32 %v1422_v63, %v1345_v45  ;;  %v1509_v30 = vadd.f32 %v1499_v2, %v1347_v7  ;;  %v2721_v26 = vpop.permute.xlu1 %2720 }
 0x62d   :  { %v2149_v5 = vmul.f32 -1.442695, %v1506_v46 }
 0x62e   :  { %v2151_v17 = vmul.f32 -1.442695, %v1507_v61  ;;  %v2153_v16 = vmul.f32 -1.442695, %v1509_v30 }
 0x62f   :  { %2898 = vpow2.f32 %v2149_v5 }
 0x630   :  { %2900 = vpow2.f32 %v2151_v17 }
 0x631   :  { %2902 = vpow2.f32 %v2152_v39 }
 0x632   :  { %2904 = vtanh.f32 %v1504_v34 }
 0x635   :  { %v2895_v14 = vpop.eup %2894 }
 0x636   :  { %v2897_v43 = vpop.eup %2896  ;;  %v1516_v9 = vadd.f32 1.0, %v2895_v14 }
 0x637   :  { %v1528_v6 = vadd.f32 1.0, %v2897_v43 }
 0x638   :  { %2906 = vrcp.f32 %v1516_v9 }
 0x639   :  { %v2899_v29 = vpop.eup %2898  ;;  %2908 = vrcp.f32 %v1528_v6  ;;  %v2723_v6 = vunpack.i.h.bf16 %v2721_v26 }
 0x63a   :  { %v2901_v56 = vpop.eup %2900  ;;  %v1517_v45 = vadd.f32 1.0, %v2899_v29  ;;  %2910 = vpow2.f32 %v2153_v16 }
 0x63b   :  { %2912 = vtanh.f32 %v1508_v54  ;;  %v1529_v38 = vadd.f32 1.0, %v2901_v56  ;;  %v2903_v47 = vpop.eup %2902 }
 0x63c   :  { %2914 = vrcp.f32 %v1517_v45  ;;  %v2905_v23 = vpop.eup %2904  ;;  %v1542_v2 = vadd.f32 1.0, %v2903_v47 }
 0x63d   :  { %2916 = vrcp.f32 %v1529_v38 }
 0x63e   :  { %2918 = vrcp.f32 %v1542_v2 }
 0x642   :  { %v2907_v60 = vpop.eup %2906 }
 0x643   :  { %v2909_v46 = vpop.eup %2908  ;;  %v1550_v63 = vmul.f32 %v2907_v60, %v2905_v23 }
 0x644   :  { %v2911_v61 = vpop.eup %2910  ;;  %v1548_v5 = vmul.f32 %v2909_v46, %v3476_v57  ;;  %v2722_v57 = vunpack.i.l.bf16 %v2721_v26 }
 0x645   :  { %v2913_v15 = vpop.eup %2912  ;;  %v1543_v39 = vadd.f32 1.0, %v2911_v61 }
 0x646   :  { %v2915_v4 = vpop.eup %2914  ;;  %v3530_v17 = vadd.f32 %v1550_v63, %v1548_v5 }
 0x647   :  { %v2917_v7 = vpop.eup %2916  ;;  %v1551_v28 = vmul.f32 %v2915_v4, %v2913_v15 }
 0x648   :  { %v1549_v30 = vmul.f32 %v2917_v7, %v3480_v31  ;;  %2920 = vtanh.f32 %v3530_v17  ;;  %v2919_v14 = vpop.eup %2918 }
 0x649   :  { %2922 = vrcp.f32 %v1543_v39 }
 0x64a   :  { %v3534_v34 = vadd.f32 %v1551_v28, %v1549_v30 }
 0x64c   :  { %2924 = vtanh.f32 %v3534_v34 }
 0x652   :  { %v2921_v43 = vpop.eup %2920 }
 0x653   :  { %v1556_v9 = vmul.f32 %v2921_v43, %v2919_v14  ;;  %v2923_v16 = vpop.eup %2922 }
 0x655   :  { %v1577_v54 = vmul.f32 %v2722_v57, %v1556_v9  ;;  %1655 = vmatmul.mubr.f32.vlgmr.msra.gmra.mrb[24].mxu0 %v1556_v9  ;;  %1732 = vmatmul.mubr.f32.vlgmr.msra.gmra.mrb[24].mxu1 %v1556_v9 }
 0x656   :  { %v2925_v29 = vpop.eup %2924  ;;  %1660 = vmatprep.mubr.f32.mxu0 %v3050_v10  ;;  %1737 = vmatprep.mubr.f32.mxu1 %v3050_v10 }
 0x657   :  { %v1557_v31 = vmul.f32 %v2925_v29, %v2923_v16  ;;  %v3540_v56 = vadd.f32 %v1577_v54, %v3486_v20  ;;  %2623 = vmatpush1.bf16.msra.mxu0 %v3122_v12  ;;  %2655 = vmatpush1.bf16.msra.mxu1 %v3136_v32  ;;  %v2170_v12 = vsel %vm2045_vm14, 1.0, %v3050_v10  ;;  %v1583_v32 = vld [vmem:[#allocation8 + $0x188] sm:$0xff]  ;;  %v1588_v20 = vld [vmem:[#allocation8 + $0x1b0] sm:$0xff] }
 0x658   :  { %2625 = vmatprep.subr.bf16.mxu0 %v3124_v13  ;;  %2657 = vmatprep.subr.bf16.mxu1 %v3146_v40  ;;  %v2171_v13 = vsel %vm2046_vm15, 1.0, %v3050_v10 }
 0x659   :  { %v1578_v45 = vmul.f32 %v2723_v6, %v1557_v31  ;;  %1661 = vmatmul.mubr.f32.gmra.mrb[26].mxu0 %v1557_v31  ;;  %1738 = vmatmul.mubr.f32.gmra.mrb[26].mxu1 %v1557_v31 }
 0x65a   :  { %1896 = vmatprep.mubr.f32.mxu0 %v3050_v10  ;;  %1973 = vmatprep.mubr.f32.mxu1 %v3050_v10 }
 0x65b   :  { %v3549_v38 = vadd.f32 %v1578_v45, %v3495_v22  ;;  %2627 = vmatpush1.bf16.msra.mxu0 %v3129_v21  ;;  %2659 = vmatpush1.bf16.msra.mxu1 %v3148_v44  ;;  %v2729_v21 = vpack.i.bf16 %v2171_v13, %v2170_v12  ;;  %v2726_v12 = vpop.permute.xlu0 %2725 }
 0x65c   :  { %2629 = vmatprep.subr.bf16.mxu0 %v3132_v24  ;;  %2661 = vmatprep.subr.bf16.mxu1 %v3154_v52  ;;  %v1582_v24 = vld [vmem:[#allocation8 + $0x180] sm:$0xff] }
 0x65d   :  { %2730 = vperm.xlu1 %2703, %v2729_v21  }
 0x65f   :  { %2631 = vmatpush1.bf16.msra.mxu0 %v3139_v33  ;;  %2663 = vmatpush1.bf16.msra.mxu1 %v3160_v55 }
 0x660   :  { %2633 = vmatprep.subr.bf16.mxu0 %v3143_v37  ;;  %2665 = vmatprep.subr.bf16.mxu1 %v3163_v59  ;;  %v1587_v59 = vld [vmem:[#allocation8 + $0x1a8] sm:$0xff] }
 0x663   :  { %2635 = vmatpush1.bf16.msra.mxu0 %v3152_v49  ;;  %2667 = vmatpush1.bf16.msra.mxu1 %v3172_v8 }
 0x664   :  { %2637 = vmatprep.subr.bf16.mxu0 %v3157_v53  ;;  %2669 = vmatprep.subr.bf16.mxu1 %v3175_v11  ;;  %v1586_v53 = vld [vmem:[#allocation8 + $0x1a0] sm:$0xff]  ;;  %v1585_v11 = vld [vmem:[#allocation8 + $0x198] sm:$0xff] }
 0x667   :  { %2639 = vmatpush1.bf16.msra.mxu0 %v3166_v62  ;;  %2671 = vmatpush1.bf16.msra.mxu1 %v3184_v25 }
 0x668   :  { %2641 = vmatprep.subr.bf16.mxu0 %v3169_v3  ;;  %2673 = vmatprep.subr.bf16.mxu1 %v3187_v27 }
 0x66b   :  { %2643 = vmatpush1.bf16.msra.mxu0 %v3178_v18  ;;  %2675 = vmatpush1.bf16.msra.mxu1 %v3196_v41 }
 0x66c   :  { %2645 = vmatprep.subr.bf16.mxu0 %v3181_v19  ;;  %2677 = vmatprep.subr.bf16.mxu1 %v3199_v42  ;;  %v1589_v42 = vld [vmem:[#allocation8 + $0x1b8] sm:$0xff] }
 0x66f   :  { %2647 = vmatpush1.bf16.msra.mxu0 %v3190_v35  ;;  %2679 = vmatpush1.bf16.msra.mxu1 %v3206_v50 }
 0x670   :  { %2649 = vmatprep.subr.bf16.mxu0 %v3193_v36  ;;  %2681 = vmatprep.subr.bf16.mxu1 %v3209_v51 }
 0x673   :  { %2651 = vmatpush1.bf16.msra.mxu0 %v3202_v48  ;;  %2683 = vmatpush1.bf16.msra.mxu1 %v3213_v58  ;;  %v1584_v48 = vld [vmem:[#allocation8 + $0x190] sm:$0xff] }
 0x728   :  { %v1656_v33 = vpop.f32.mrb[24].mxu0  ;;  %v1733_v37 = vpop.f32.mrb[24].mxu1 }
 0x729   :  { %v1744_v40 = vadd.f32 %v1656_v33, %v1582_v24  ;;  %v1658_v44 = vpop.f32.mrb[25].mxu0  ;;  %v1735_v49 = vpop.f32.mrb[25].mxu1  ;;  %v1746_v58 = vadd.f32 %v1733_v37, %v1584_v48  ;;  %v2728_v33 = vunpack.i.h.bf16 %v2726_v12 }
 0x72a   :  { %v1745_v52 = vadd.f32 %v1658_v44, %v1583_v32  ;;  %v1747_v36 = vadd.f32 %v1735_v49, %v1585_v11 }
 0x72b   :  { %v2156_v55 = vmul.f32 -1.442695, %v1744_v40 }
 0x72c   :  { %v2158_v62 = vmul.f32 -1.442695, %v1745_v52  ;;  %v1662_v3 = vpop.f32.mrb[26].mxu0  ;;  %v1739_v8 = vpop.f32.mrb[26].mxu1  ;;  %v2160_v50 = vmul.f32 -1.442695, %v1747_v36 }
 0x72d   :  { %2926 = vpow2.f32 %v2156_v55  ;;  %v1748_v18 = vadd.f32 %v1662_v3, %v1586_v53  ;;  %v1664_v19 = vpop.f32.mrb[27].mxu0  ;;  %v1741_v25 = vpop.f32.mrb[27].mxu1  ;;  %v1750_v63 = vadd.f32 %v1739_v8, %v1588_v20  ;;  %v1824_v53 = vld [vmem:[#allocation8 + $0x1c0] sm:$0xff]  ;;  %v1825_v55 = vld [vmem:[#allocation8 + $0x1c8] sm:$0xff]  ;;  %v1827_v36 = vld [vmem:[#allocation8 + $0x1d8] sm:$0xff] }
 0x72e   :  { %2928 = vpow2.f32 %v2158_v62  ;;  %v1749_v27 = vadd.f32 %v1664_v19, %v1587_v59  ;;  %v1751_v51 = vadd.f32 %v1741_v25, %v1589_v42  ;;  %v1828_v19 = vld [vmem:[#allocation8 + $0x1e0] sm:$0xff]  ;;  %v1829_v25 = vld [vmem:[#allocation8 + $0x1e8] sm:$0xff]  ;;  %v1831_v20 = vld [vmem:[#allocation8 + $0x1f8] sm:$0xff] }
 0x72f   :  { %v2157_v35 = vmul.f32 -1.442695, %v1748_v18 }
 0x730   :  { %v2159_v41 = vmul.f32 -1.442695, %v1749_v27  ;;  %v2161_v60 = vmul.f32 -1.442695, %v1751_v51 }
 0x731   :  { %2930 = vpow2.f32 %v2157_v35 }
 0x732   :  { %2932 = vpow2.f32 %v2159_v41 }
 0x733   :  { %2934 = vpow2.f32 %v2160_v50 }
 0x734   :  { %2936 = vtanh.f32 %v1746_v58 }
 0x737   :  { %v2927_v22 = vpop.eup %2926 }
 0x738   :  { %v2929_v47 = vpop.eup %2928  ;;  %v1758_v23 = vadd.f32 1.0, %v2927_v22  ;;  %v1826_v22 = vld [vmem:[#allocation8 + $0x1d0] sm:$0xff] }
 0x739   :  { %v1770_v46 = vadd.f32 1.0, %v2929_v47 }
 0x73a   :  { %2938 = vrcp.f32 %v1758_v23 }
 0x73b   :  { %v2931_v2 = vpop.eup %2930  ;;  %2940 = vrcp.f32 %v1770_v46  ;;  %v1830_v46 = vld [vmem:[#allocation8 + $0x1f0] sm:$0xff] }
 0x73c   :  { %v2933_v61 = vpop.eup %2932  ;;  %v1759_v5 = vadd.f32 1.0, %v2931_v2  ;;  %2942 = vpow2.f32 %v2161_v60 }
 0x73d   :  { %2944 = vtanh.f32 %v1750_v63  ;;  %v1771_v15 = vadd.f32 1.0, %v2933_v61  ;;  %v2935_v4 = vpop.eup %2934 }
 0x73e   :  { %2946 = vrcp.f32 %v1759_v5  ;;  %v2937_v7 = vpop.eup %2936  ;;  %v1784_v26 = vadd.f32 1.0, %v2935_v4 }
 0x73f   :  { %2948 = vrcp.f32 %v1771_v15 }
 0x740   :  { %2950 = vrcp.f32 %v1784_v26 }
 0x744   :  { %v2939_v28 = vpop.eup %2938 }
 0x745   :  { %v2941_v39 = vpop.eup %2940  ;;  %v1792_v30 = vmul.f32 %v2939_v28, %v2937_v7 }
 0x746   :  { %v2943_v14 = vpop.eup %2942  ;;  %v1790_v57 = vmul.f32 %v2941_v39, %v3530_v17  ;;  %v2727_v17 = vunpack.i.l.bf16 %v2726_v12 }
 0x747   :  { %v2945_v43 = vpop.eup %2944  ;;  %v1785_v29 = vadd.f32 1.0, %v2943_v14 }
 0x748   :  { %v2947_v9 = vpop.eup %2946  ;;  %v3582_v16 = vadd.f32 %v1792_v30, %v1790_v57 }
 0x749   :  { %v2949_v6 = vpop.eup %2948  ;;  %v1793_v54 = vmul.f32 %v2947_v9, %v2945_v43 }
 0x74a   :  { %v1791_v31 = vmul.f32 %v2949_v6, %v3534_v34  ;;  %2952 = vtanh.f32 %v3582_v16  ;;  %v2951_v13 = vpop.eup %2950 }
 0x74b   :  { %2954 = vrcp.f32 %v1785_v29 }
 0x74c   :  { %v3586_v45 = vadd.f32 %v1793_v54, %v1791_v31 }
 0x74e   :  { %2956 = vtanh.f32 %v3586_v45 }
 0x754   :  { %v2953_v21 = vpop.eup %2952 }
 0x755   :  { %v1798_v24 = vmul.f32 %v2953_v21, %v2951_v13  ;;  %v2955_v32 = vpop.eup %2954 }
 0x757   :  { %v1819_v37 = vmul.f32 %v2727_v17, %v1798_v24  ;;  %1897 = vmatmul.mubr.f32.vlgmr.msra.gmra.mrb[28].mxu0 %v1798_v24  ;;  %1974 = vmatmul.mubr.f32.vlgmr.msra.gmra.mrb[28].mxu1 %v1798_v24 }
 0x758   :  { %v2957_v40 = vpop.eup %2956  ;;  %1902 = vmatprep.mubr.f32.mxu0 %v3050_v10  ;;  %1979 = vmatprep.mubr.f32.mxu1 %v3050_v10 }
 0x759   :  { %v1799_v34 = vmul.f32 %v2957_v40, %v2955_v32  ;;  %v3592_v44 = vadd.f32 %v1819_v37, %v3540_v56  ;;  %v2731_v37 = vpop.permute.xlu1 %2730 }
 0x75b   :  { %v1820_v49 = vmul.f32 %v2728_v33, %v1799_v34  ;;  %1903 = vmatmul.mubr.f32.gmra.mrb[30].mxu0 %v1799_v34  ;;  %1980 = vmatmul.mubr.f32.gmra.mrb[30].mxu1 %v1799_v34 }
 0x75d   :  { %v3595_v52 = vadd.f32 %v1820_v49, %v3549_v38  ;;  %v2732_v49 = vunpack.i.l.bf16 %v2731_v37 }
 0x82a   :  { %v1898_v59 = vpop.f32.mrb[28].mxu0  ;;  %v1975_v62 = vpop.f32.mrb[28].mxu1 }
 0x82b   :  { %v1986_v3 = vadd.f32 %v1898_v59, %v1824_v53  ;;  %v1900_v8 = vpop.f32.mrb[29].mxu0  ;;  %v1977_v11 = vpop.f32.mrb[29].mxu1  ;;  %v1988_v60 = vadd.f32 %v1975_v62, %v1826_v22  ;;  %v2733_v62 = vunpack.i.h.bf16 %v2731_v37 }
 0x82c   :  { %v1987_v18 = vadd.f32 %v1900_v8, %v1825_v55  ;;  %v1989_v51 = vadd.f32 %v1977_v11, %v1827_v36 }
 0x82d   :  { %v2164_v10 = vmul.f32 -1.442695, %v1986_v3 }
 0x82e   :  { %v2166_v27 = vmul.f32 -1.442695, %v1987_v18  ;;  %v1904_v56 = vpop.f32.mrb[30].mxu0  ;;  %v1981_v35 = vpop.f32.mrb[30].mxu1  ;;  %v2168_v47 = vmul.f32 -1.442695, %v1989_v51 }
 0x82f   :  { %2958 = vpow2.f32 %v2164_v10  ;;  %v1990_v41 = vadd.f32 %v1904_v56, %v1828_v19  ;;  %v1906_v42 = vpop.f32.mrb[31].mxu0  ;;  %v1983_v38 = vpop.f32.mrb[31].mxu1  ;;  %v1992_v4 = vadd.f32 %v1981_v35, %v1830_v46 }
 0x830   :  { %2960 = vpow2.f32 %v2166_v27  ;;  %v1991_v48 = vadd.f32 %v1906_v42, %v1829_v25  ;;  %v1993_v23 = vadd.f32 %v1983_v38, %v1831_v20 }
 0x831   :  { %v2165_v50 = vmul.f32 -1.442695, %v1990_v41 }
 0x832   :  { %v2167_v58 = vmul.f32 -1.442695, %v1991_v48  ;;  %v2169_v5 = vmul.f32 -1.442695, %v1993_v23 }
 0x833   :  { %2962 = vpow2.f32 %v2165_v50 }
 0x834   :  { %2964 = vpow2.f32 %v2167_v58 }
 0x835   :  { %2966 = vpow2.f32 %v2168_v47 }
 0x836   :  { %2968 = vtanh.f32 %v1988_v60 }
 0x839   :  { %v2959_v63 = vpop.eup %2958 }
 0x83a   :  { %v2961_v2 = vpop.eup %2960  ;;  %v2000_v61 = vadd.f32 1.0, %v2959_v63 }
 0x83b   :  { %v2012_v15 = vadd.f32 1.0, %v2961_v2 }
 0x83c   :  { %2970 = vrcp.f32 %v2000_v61 }
 0x83d   :  { %v2963_v7 = vpop.eup %2962  ;;  %2972 = vrcp.f32 %v2012_v15 }
 0x83e   :  { %v2965_v28 = vpop.eup %2964  ;;  %v2001_v39 = vadd.f32 1.0, %v2963_v7  ;;  %2974 = vpow2.f32 %v2169_v5 }
 0x83f   :  { %2976 = vtanh.f32 %v1992_v4  ;;  %v2013_v30 = vadd.f32 1.0, %v2965_v28  ;;  %v2967_v26 = vpop.eup %2966 }
 0x840   :  { %2978 = vrcp.f32 %v2001_v39  ;;  %v2969_v14 = vpop.eup %2968  ;;  %v2026_v6 = vadd.f32 1.0, %v2967_v26 }
 0x841   :  { %2980 = vrcp.f32 %v2013_v30 }
 0x842   :  { %2982 = vrcp.f32 %v2026_v6 }
 0x846   :  { %v2971_v57 = vpop.eup %2970 }
 0x847   :  { %v2973_v43 = vpop.eup %2972  ;;  %v2034_v9 = vmul.f32 %v2971_v57, %v2969_v14 }
 0x848   :  { %v2975_v54 = vpop.eup %2974  ;;  %v2032_v29 = vmul.f32 %v2973_v43, %v3582_v16 }
 0x849   :  { %v2977_v31 = vpop.eup %2976  ;;  %v2027_v24 = vadd.f32 1.0, %v2975_v54 }
 0x84a   :  { %v2979_v12 = vpop.eup %2978  ;;  %v2036_v13 = vadd.f32 %v2034_v9, %v2032_v29 }
 0x84b   :  { %v2981_v17 = vpop.eup %2980  ;;  %v2035_v21 = vmul.f32 %v2979_v12, %v2977_v31 }
 0x84c   :  { %v2033_v32 = vmul.f32 %v2981_v17, %v3586_v45  ;;  %2984 = vtanh.f32 %v2036_v13  ;;  %2067 = vst [vmem:[#allocation4] sm:$0xff] %v2036_v13  ;;  %v2983_v40 = vpop.eup %2982 }
 0x84d   :  { %2986 = vrcp.f32 %v2027_v24 }
 0x84e   :  { %v2037_v33 = vadd.f32 %v2035_v21, %v2033_v32 }
 0x850   :  { %2988 = vtanh.f32 %v2037_v33  ;;  %2068 = vst [vmem:[#allocation4 + $0x8] sm:$0xff] %v2037_v33 }
 0x856   :  { %v2985_v34 = vpop.eup %2984 }
 0x857   :  { %v2040_v16 = vmul.f32 %v2985_v34, %v2983_v40  ;;  %v2987_v53 = vpop.eup %2986 }
 0x859   :  { %v2061_v55 = vmul.f32 %v2732_v49, %v2040_v16  ;;  %2065 = vst [vmem:[#allocation3] sm:$0xff] %v2040_v16 }
 0x85a   :  { %v2989_v59 = vpop.eup %2988 }
 0x85b   :  { %v2041_v3 = vmul.f32 %v2989_v59, %v2987_v53  ;;  %v2063_v8 = vadd.f32 %v2061_v55, %v3592_v44 }
 0x85d   :  { %v2062_v45 = vmul.f32 %v2733_v62, %v2041_v3  ;;  %2066 = vst [vmem:[#allocation3 + $0x8] sm:$0xff] %v2041_v3  ;;  %2069 = vst [vmem:[#allocation5] sm:$0xff] %v2063_v8 }
 0x85f   :  { %v2064_v11 = vadd.f32 %v2062_v45, %v3595_v52 }
 0x861   :  { %2070 = vst [vmem:[#allocation5 + $0x8] sm:$0xff] %v2064_v11 }
 0x862 PF:  { %v2076_v18 = vmax.f32 %v3105_v0, 1.0  ;;  %v3052_v19 = vmov 0   ;;  %v2077_v10 = vmax.f32 %v3110_v1, 1.0  ;;  %vm2099_vm0 = vcmask 7168  }
 0x863   :  { %2990 = vset.pattern.permute.xlu0 %v3052_v19 }
 0x864   :  { %2080 = vperm.xlu0 %2990, %v2076_v18   ;;  %v2074_v56 = vld [vmem:[#allocation5] sm:$0xff] }
 0x868   :  { %2085 = vperm.xlu0 %2990, %v2077_v10   ;;  %v2075_v35 = vld [vmem:[#allocation5 + $0x8] sm:$0xff] }
 0x8e3   :  { %v2081_v25 = vpop.permute.xlu0 %2080 }
 0x8e4   :  { %2991 = vrcp.f32 %v2081_v25 }
 0x8e7   :  { %v2086_v27 = vpop.permute.xlu0 %2085 }
 0x8e8   :  { %2993 = vrcp.f32 %v2086_v27 }
 0x8ee   :  { %v2992_v44 = vpop.eup %2991 }
 0x8ef   :  { %v2089_v41 = vmul.f32 %v2992_v44, %v2074_v56 }
 0x8f2   :  { %v2994_v36 = vpop.eup %2993 }
 0x8f3   :  { %v2091_v52 = vmul.f32 %v2994_v36, %v2075_v35 }
 0x8f5   :  { %v2092_v42 = vsub.f32 %v2089_v41, %v2091_v52 }
 0x8f7   :  { %v2093_v38 = vand.u32 2147483647, %v2092_v42 }
 0x8f9   :  { %2094 = vadd.xlane.f32.xlu1 %v2093_v38 }
 0x986   :  { %v2095_v0 = vpop.xlane.xlu1 %2094 }
 0x987   :  { %v2096_v48 = vsub.f32 0.0, %v2095_v0 }
 0x989   :  { %v2097_v50 = vmul.f32 1.442695, %v2096_v48 }
 0x98b   :  { %2995 = vpow2.f32 %v2097_v50 }
 0x995   :  { %v2996_v1 = vpop.eup %2995 }
 0x996   :  { %2100 = vst.msk [vmem:[%s3610_s4] sm:$0xff] %vm2099_vm0, %v2996_v1 }
 0x997   :  { %2105 = vsyncpa [#allocation9], 1 }

</bundles_post_ra>
